<compile_context>
chip_gen: v7x
topology: tpu7x:2x2x1
jax: 0.10.0
libtpu: 0.0.40
codegen_flags: <defaults>
</compile_context>

<pallas_src>
import jax
import jax.numpy as jnp
from jax import lax
from jax.experimental import pallas as pl
from jax.experimental.pallas import tpu as pltpu

NUM_LAYERS = 4


def _round_up(x, m):
    return ((x + m - 1) // m) * m


def weavenet_kernel(src_ref, dst_ref, dstr_ref, nx_ref, ea_ref,
                    wn_ref, bn_ref, we_ref, be_ref,
                    w1a_ref, w1b_ref, b1_ref, w2_ref, b2_ref,
                    wf1a_ref, wf1b_ref, bf1_ref, wf2_ref, bf2_ref,
                    out_ref, x_ref, xnext_ref):
    f32 = jnp.float32
    bf16 = jnp.bfloat16

    l = pl.program_id(0)                 # 0..L-1 weave layers, L == final scoring
    t = pl.program_id(1)                 # edge tile
    n_layers = pl.num_programs(0) - 1
    n_tiles = pl.num_programs(1)

    te = src_ref.shape[0]                # edges per tile
    n_pad = x_ref.shape[0]               # padded node count

    # ---- once, at the very first grid step: node projection into resident x ----
    @pl.when((l == 0) & (t == 0))
    def _init():
        x_ref[...] = jnp.dot(nx_ref[...], wn_ref[...],
                             preferred_element_type=f32) + bn_ref[...]

    # ---- per-tile one-hot gather masks built in-kernel from int32 indices ----
    # (padded edges carry the sentinel id n_pad -> all-zero mask rows)
    node_row = lax.broadcasted_iota(jnp.int32, (te, n_pad), 1)
    s_mask = (src_ref[...] == node_row).astype(f32).astype(bf16)     # [tE, N]
    d_mask = (dst_ref[...] == node_row).astype(f32).astype(bf16)     # [tE, N]

    xb = x_ref[...].astype(bf16)
    x_src = jnp.dot(s_mask, xb, preferred_element_type=f32)          # x[src] (x_j)
    x_dst = jnp.dot(d_mask, xb, preferred_element_type=f32)          # x[dst] (x_i)

    # ------------------------------ weave layers ------------------------------
    @pl.when(l < n_layers)
    def _weave():
        # edge_proj for this tile (cheap; recomputed per layer instead of
        # keeping an [E, H] buffer resident)
        e = jnp.dot(ea_ref[...], we_ref[...], preferred_element_type=f32) + be_ref[...]
        ssum = x_src + x_dst                                          # f32 elementwise
        h = (jnp.dot(ssum.astype(bf16), w1a_ref[0], preferred_element_type=f32)
             + jnp.dot(e.astype(bf16), w1b_ref[0], preferred_element_type=f32)
             + b1_ref[0])
        h = jnp.maximum(h, 0.0)
        msg = jnp.dot(h.astype(bf16), w2_ref[0], preferred_element_type=f32) + b2_ref[0]

        # scatter-add onto dst nodes: transposed one-hot built in place from the
        # row-layout dst indices (no [N, E] matrix ever materialised)
        node_col = lax.broadcasted_iota(jnp.int32, (n_pad, te), 0)
        dt_mask = (dstr_ref[0] == node_col).astype(f32).astype(bf16)  # [N, tE]
        part = jnp.dot(dt_mask, msg.astype(bf16), preferred_element_type=f32)

        @pl.when(t == 0)
        def _zero():
            xnext_ref[...] = jnp.zeros_like(xnext_ref)

        xnext_ref[...] += part

        # after the last edge tile of this layer, commit x <- aggregated messages
        @pl.when(t == n_tiles - 1)
        def _commit():
            x_ref[...] = xnext_ref[...]

    # --------------------------- final edge scoring ----------------------------
    @pl.when(l == n_layers)
    def _final():
        h = (jnp.dot(x_src.astype(bf16), wf1a_ref[...], preferred_element_type=f32)
             + jnp.dot(x_dst.astype(bf16), wf1b_ref[...], preferred_element_type=f32)
             + bf1_ref[...])
        h = jnp.maximum(h, 0.0)
        # lane-dense (1, tE) score row:  wf2_row @ h^T  ==  (h @ wf2)^T
        scores = lax.dot_general(wf2_ref[...], h.astype(bf16),
                                 dimension_numbers=(((1,), (1,)), ((), ())),
                                 preferred_element_type=f32)
        out_ref[...] = scores + bf2_ref[0, 0]


def weavenet_forward(node_x, edge_attr, edge_index, params, *, edge_tile=256):
    f32, bf16, i32 = jnp.float32, jnp.bfloat16, jnp.int32
    N, node_dim = node_x.shape
    E, edge_dim = edge_attr.shape
    H = params['wn'].shape[1]
    L = params['w1a'].shape[0]
    src, dst = edge_index

    # ---- tiling: nodes padded to a sublane multiple, edges tiled along the grid ----
    n_pad = _round_up(max(N, 8), 8)
    if E <= edge_tile:
        te = _round_up(max(E, 8), 8)          # single edge tile
    else:
        te = _round_up(edge_tile, 128)        # multi-tile: lane-aligned tiles
    e_pad = _round_up(E, te)
    n_tiles = e_pad // te

    # ---- pad & pack.  Padded edges use sentinel node id n_pad (outside the
    #      in-kernel iota range) so they gather zeros and scatter nowhere. ----
    nx = jnp.zeros((n_pad, node_dim), bf16).at[:N].set(node_x.astype(bf16))
    ea = jnp.zeros((e_pad, edge_dim), bf16).at[:E].set(edge_attr.astype(bf16))
    src_col = jnp.full((e_pad, 1), n_pad, i32).at[:E, 0].set(src.astype(i32))
    dst_col = jnp.full((e_pad, 1), n_pad, i32).at[:E, 0].set(dst.astype(i32))
    dst_row = dst_col.reshape(n_tiles, 1, te)

    cast = lambda w: w.astype(bf16)           # MXU operands in bf16, f32 accumulation
    args = (src_col, dst_col, dst_row, nx, ea,
            cast(params['wn']), params['bn'], cast(params['we']), params['be'],
            cast(params['w1a']), cast(params['w1b']), params['b1'],
            cast(params['w2']), params['b2'],
            cast(params['wf1a']), cast(params['wf1b']), params['bf1'],
            cast(params['wf2'].reshape(1, H)), params['bf2'])

    def const(*blk):
        zeros = (0,) * len(blk)
        return pl.BlockSpec(blk, lambda l, t: zeros)

    def per_tile(*blk):
        zeros = (0,) * (len(blk) - 1)
        return pl.BlockSpec(blk, lambda l, t: (t,) + zeros)

    def per_layer(*blk):
        zeros = (0,) * (len(blk) - 1)
        return pl.BlockSpec(blk, lambda l, t: (jnp.minimum(l, L - 1),) + zeros)

    in_specs = [
        per_tile(te, 1),                   # src (column layout, for gather mask)
        per_tile(te, 1),                   # dst (column layout, for gather mask)
        per_tile(1, 1, te),                # dst (row layout, for scatter mask)
        const(n_pad, node_dim),            # node features (fetched once)
        per_tile(te, edge_dim),            # edge features
        const(node_dim, H), const(1, H),   # node_proj
        const(edge_dim, H), const(1, H),   # edge_proj
        per_layer(1, H, H), per_layer(1, H, H), per_layer(1, 1, H),   # layer MLP lin1
        per_layer(1, H, H), per_layer(1, 1, H),                       # layer MLP lin2
        const(H, H), const(H, H), const(1, H),                        # final MLP lin1
        const(1, H),                                                  # final MLP lin2 (row)
        pl.BlockSpec(memory_space=pltpu.MemorySpace.SMEM),            # final scalar bias
    ]
    out_specs = pl.BlockSpec((1, te), lambda l, t: (0, t))            # lane-dense scores

    # advisory cost hint for the XLA scheduler
    gather = 2 * e_pad * n_pad * H
    mlp = 2 * e_pad * H * H
    flops = ((L + 1) * 2 * gather
             + L * (gather + 3 * mlp + 2 * e_pad * edge_dim * H)
             + 2 * mlp + 2 * e_pad * H + 2 * n_pad * node_dim * H)
    bytes_accessed = int(sum(int(a.size) * a.dtype.itemsize for a in args) + e_pad * 4)
    cost = pl.CostEstimate(flops=int(flops), transcendentals=0,
                           bytes_accessed=bytes_accessed)

    out = pl.pallas_call(
        weavenet_kernel,
        out_shape=jax.ShapeDtypeStruct((1, e_pad), f32),
        grid_spec=pltpu.PrefetchScalarGridSpec(
            num_scalar_prefetch=0,
            grid=(L + 1, n_tiles),
            in_specs=in_specs,
            out_specs=out_specs,
            scratch_shapes=[pltpu.VMEM((n_pad, H), f32),   # x       (resident node feats)
                            pltpu.VMEM((n_pad, H), f32)],  # x_next  (scatter accumulator)
        ),
        compiler_params=pltpu.CompilerParams(
            dimension_semantics=("arbitrary", "arbitrary")),
        cost_estimate=cost,
    )(*args)
    return out[0, :E]


def reference_forward(node_x, edge_attr, edge_index, params):
    """Plain-JAX float32 reference matching the PyTorch module
    (PyG MessagePassing, aggr='add', identity update)."""
    src, dst = edge_index
    x = node_x @ params['wn'] + params['bn'][0]
    e = edge_attr @ params['we'] + params['be'][0]
    for l in range(params['w1a'].shape[0]):
        s = x[dst] + x[src]                                 # x_i + x_j
        h = jnp.maximum(s @ params['w1a'][l] + e @ params['w1b'][l] + params['b1'][l][0], 0.0)
        msg = h @ params['w2'][l] + params['b2'][l][0]
        x = jnp.zeros_like(x).at[dst].add(msg)              # sum-aggregate onto targets
    h = jnp.maximum(x[src] @ params['wf1a'] + x[dst] @ params['wf1b'] + params['bf1'][0], 0.0)
    return (h @ params['wf2'] + params['bf2'][0])[:, 0]


def reference_forward_bf16(node_x, edge_attr, edge_index, params):
    """Same graph semantics, but mirrors the kernel's numerics: every MXU operand
    rounded to bfloat16, float32 accumulation (one-hot gather/scatter is exact)."""
    bf16, f32 = jnp.bfloat16, jnp.float32
    mm = lambda a, w: jnp.dot(a.astype(bf16), w.astype(bf16), preferred_element_type=f32)
    q = lambda a: a.astype(bf16).astype(f32)
    src, dst = edge_index
    x = mm(node_x, params['wn']) + params['bn'][0]
    e = mm(edge_attr, params['we']) + params['be'][0]
    for l in range(params['w1a'].shape[0]):
        xq = q(x)
        s = xq[dst] + xq[src]
        h = jnp.maximum(mm(s, params['w1a'][l]) + mm(e, params['w1b'][l]) + params['b1'][l][0], 0.0)
        msg = mm(h, params['w2'][l]) + params['b2'][l][0]
        x = jnp.zeros_like(x).at[dst].add(q(msg))
    xq = q(x)
    h = jnp.maximum(mm(xq[src], params['wf1a']) + mm(xq[dst], params['wf1b']) + params['bf1'][0], 0.0)
    return (mm(h, params['wf2']) + params['bf2'][0])[:, 0]


def init_params(key, node_dim, edge_dim, H, L):
    ks = jax.random.split(key, 14)

    def w(k, shape, fan_in):
        return jax.random.normal(k, shape, jnp.float32) * (1.0 / jnp.sqrt(fan_in))

    return {
        # node_proj / edge_proj
        'wn': w(ks[0], (node_dim, H), node_dim), 'bn': w(ks[1], (1, H), node_dim),
        'we': w(ks[2], (edge_dim, H), edge_dim), 'be': w(ks[3], (1, H), edge_dim),
        # per-layer message MLP (Linear(2H,H) split into two HxH blocks), stacked over layers
        'w1a': w(ks[4], (L, H, H), 2 * H), 'w1b': w(ks[5], (L, H, H), 2 * H),
        'b1':  w(ks[6], (L, 1, H), 2 * H),
        'w2':  w(ks[7], (L, H, H), H), 'b2': w(ks[8], (L, 1, H), H),
        # final MLP (Linear(2H,H) split, then Linear(H,1))
        'wf1a': w(ks[9], (H, H), 2 * H), 'wf1b': w(ks[10], (H, H), 2 * H),
        'bf1':  w(ks[11], (1, H), 2 * H),
        'wf2':  w(ks[12], (H, 1), H), 'bf2': w(ks[13], (1, 1), H),
    }


if __name__ == "__main__":
    key = jax.random.PRNGKey(0)
    node_dim, edge_dim, hidden_dim = 8, 8, 32
    N, E = 24, 300        # small graph; E > edge_tile so the edge-tiled grid runs 3 tiles

    k = jax.random.split(key, 5)
    node_x = jax.random.normal(k[0], (N, node_dim), jnp.float32)
    edge_attr = jax.random.normal(k[1], (E, edge_dim), jnp.float32)
    src = jax.random.randint(k[2], (E,), 0, N)
    dst = jax.random.randint(k[3], (E,), 0, N)
    params = init_params(k[4], node_dim, edge_dim, hidden_dim, NUM_LAYERS)

    scores = weavenet_forward(node_x, edge_attr, (src, dst), params, edge_tile=128)
    scores = jax.block_until_ready(scores)
    assert scores.shape == (E,)
    assert bool(jnp.all(jnp.isfinite(scores)))

    # primary check: bf16-matched reference (same math as the kernel)
    ref_bf16 = reference_forward_bf16(node_x, edge_attr, (src, dst), params)
    scale = float(jnp.max(jnp.abs(ref_bf16)))
    assert float(jnp.max(jnp.abs(scores - ref_bf16))) <= 2e-2 * scale + 1e-2, \
        "Pallas kernel mismatch vs bf16-matched JAX reference"

    # sanity check: kernel stays close to the original float32 module semantics
    # (bf16 MXU operands with f32 accumulation introduce only small drift)
    ref_f32 = reference_forward(node_x, edge_attr, (src, dst), params)
    scale32 = float(jnp.max(jnp.abs(ref_f32)))
    assert float(jnp.max(jnp.abs(scores - ref_f32))) <= 2e-1 * scale32 + 1e-1, \
        "Pallas kernel drifted too far from the float32 reference"

    print("KERNEL_OK")
</pallas_src>

<mosaic_0001>
module attributes {stable_mosaic.version = 11 : i64} {
  func.func @weavenet_kernel(%arg0: i32, %arg1: i32, %arg2: memref<128x1xi32, #tpu.memory_space<vmem>>, %arg3: memref<128x1xi32, #tpu.memory_space<vmem>>, %arg4: memref<1x1x128xi32, #tpu.memory_space<vmem>>, %arg5: memref<24x8xbf16, #tpu.memory_space<vmem>>, %arg6: memref<128x8xbf16, #tpu.memory_space<vmem>>, %arg7: memref<8x32xbf16, #tpu.memory_space<vmem>>, %arg8: memref<1x32xf32, #tpu.memory_space<vmem>>, %arg9: memref<8x32xbf16, #tpu.memory_space<vmem>>, %arg10: memref<1x32xf32, #tpu.memory_space<vmem>>, %arg11: memref<1x32x32xbf16, #tpu.memory_space<vmem>>, %arg12: memref<1x32x32xbf16, #tpu.memory_space<vmem>>, %arg13: memref<1x1x32xf32, #tpu.memory_space<vmem>>, %arg14: memref<1x32x32xbf16, #tpu.memory_space<vmem>>, %arg15: memref<1x1x32xf32, #tpu.memory_space<vmem>>, %arg16: memref<32x32xbf16, #tpu.memory_space<vmem>>, %arg17: memref<32x32xbf16, #tpu.memory_space<vmem>>, %arg18: memref<1x32xf32, #tpu.memory_space<vmem>>, %arg19: memref<1x32xbf16, #tpu.memory_space<vmem>>, %arg20: memref<1x1xf32, #tpu.memory_space<smem>>, %arg21: memref<1x128xf32, #tpu.memory_space<vmem>>, %arg22: memref<24x32xf32, #tpu.memory_space<vmem>>, %arg23: memref<24x32xf32, #tpu.memory_space<vmem>>) attributes {dimension_semantics = [#tpu.dimension_semantics<arbitrary>, #tpu.dimension_semantics<arbitrary>], iteration_bounds = array<i64: 5, 3>, scalar_prefetch = 0 : i64, scratch_operands = 2 : i64, tpu.core_type = #tpu.core_type<tc>, window_params = [{transform_indices = @transform_0, window_bounds = array<i64: 128, 1>}, {transform_indices = @transform_1, window_bounds = array<i64: 128, 1>}, {transform_indices = @transform_2, window_bounds = array<i64: 1, 1, 128>}, {pipeline_mode = #tpu.pipeline_mode<synchronous>, transform_indices = @transform_3, window_bounds = array<i64: 24, 8>}, {transform_indices = @transform_4, window_bounds = array<i64: 128, 8>}, {pipeline_mode = #tpu.pipeline_mode<synchronous>, transform_indices = @transform_5, window_bounds = array<i64: 8, 32>}, {pipeline_mode = #tpu.pipeline_mode<synchronous>, transform_indices = @transform_6, window_bounds = array<i64: 1, 32>}, {pipeline_mode = #tpu.pipeline_mode<synchronous>, transform_indices = @transform_7, window_bounds = array<i64: 8, 32>}, {pipeline_mode = #tpu.pipeline_mode<synchronous>, transform_indices = @transform_8, window_bounds = array<i64: 1, 32>}, {transform_indices = @transform_9, window_bounds = array<i64: 1, 32, 32>}, {transform_indices = @transform_10, window_bounds = array<i64: 1, 32, 32>}, {transform_indices = @transform_11, window_bounds = array<i64: 1, 1, 32>}, {transform_indices = @transform_12, window_bounds = array<i64: 1, 32, 32>}, {transform_indices = @transform_13, window_bounds = array<i64: 1, 1, 32>}, {pipeline_mode = #tpu.pipeline_mode<synchronous>, transform_indices = @transform_14, window_bounds = array<i64: 32, 32>}, {pipeline_mode = #tpu.pipeline_mode<synchronous>, transform_indices = @transform_15, window_bounds = array<i64: 32, 32>}, {pipeline_mode = #tpu.pipeline_mode<synchronous>, transform_indices = @transform_16, window_bounds = array<i64: 1, 32>}, {pipeline_mode = #tpu.pipeline_mode<synchronous>, transform_indices = @transform_17, window_bounds = array<i64: 1, 32>}, {transform_indices = @transform_18, window_bounds = array<i64: 1, 1>}, {transform_indices = @transform_19, window_bounds = array<i64: 1, 128>}]} {
    %c0_i32 = arith.constant 0 : i32
    %0 = arith.cmpi eq, %arg0, %c0_i32 : i32
    %c0_i32_0 = arith.constant 0 : i32
    %1 = arith.cmpi eq, %arg1, %c0_i32_0 : i32
    %2 = arith.andi %0, %1 : i1
    %3 = arith.extui %2 : i1 to i32
    %c0_i32_1 = arith.constant 0 : i32
    %4 = arith.cmpi ne, %3, %c0_i32_1 : i32
    scf.if %4 {
      %c0_11 = arith.constant 0 : index
      %c0_12 = arith.constant 0 : index
      %28 = vector.load %arg5[%c0_11, %c0_12] : memref<24x8xbf16, #tpu.memory_space<vmem>>, vector<24x8xbf16>
      %c0_13 = arith.constant 0 : index
      %c0_14 = arith.constant 0 : index
      %29 = vector.load %arg7[%c0_13, %c0_14] : memref<8x32xbf16, #tpu.memory_space<vmem>>, vector<8x32xbf16>
      %cst_15 = arith.constant dense<0.000000e+00> : vector<24x32xf32>
      %30 = tpu.matmul %28, %29, %cst_15 {dimension_numbers = #tpu.dot_dimension_numbers<[1], [0], [0], [1], [0, 0, 1, 1], [], []>} : vector<24x8xbf16>, vector<8x32xbf16>, vector<24x32xf32> -> vector<24x32xf32>
      %c0_16 = arith.constant 0 : index
      %c0_17 = arith.constant 0 : index
      %31 = vector.load %arg8[%c0_16, %c0_17] : memref<1x32xf32, #tpu.memory_space<vmem>>, vector<1x32xf32>
      %32 = vector.broadcast %31 : vector<1x32xf32> to vector<24x32xf32>
      %33 = arith.addf %30, %32 : vector<24x32xf32>
      %c0_18 = arith.constant 0 : index
      %c0_19 = arith.constant 0 : index
      %34 = vector.load %arg22[%c0_18, %c0_19] : memref<24x32xf32, #tpu.memory_space<vmem>>, vector<24x32xf32>
      tpu.vector_store %arg22[%c0_18, %c0_19], %33 {strides = array<i32>} : memref<24x32xf32, #tpu.memory_space<vmem>>, vector<24x32xf32>,
    } else {
    }
    %5 = tpu.iota {dimensions = array<i32: 1>} : vector<128x24xi32>
    %c0 = arith.constant 0 : index
    %c0_2 = arith.constant 0 : index
    %6 = vector.load %arg2[%c0, %c0_2] : memref<128x1xi32, #tpu.memory_space<vmem>>, vector<128x1xi32>
    %7 = vector.broadcast %6 : vector<128x1xi32> to vector<128x24xi32>
    %8 = arith.cmpi eq, %7, %5 : vector<128x24xi32>
    %9 = arith.extui %8 : vector<128x24xi1> to vector<128x24xi32>
    %10 = arith.sitofp %9 : vector<128x24xi32> to vector<128x24xf32>
    %11 = arith.truncf %10 : vector<128x24xf32> to vector<128x24xbf16>
    %c0_3 = arith.constant 0 : index
    %c0_4 = arith.constant 0 : index
    %12 = vector.load %arg3[%c0_3, %c0_4] : memref<128x1xi32, #tpu.memory_space<vmem>>, vector<128x1xi32>
    %13 = vector.broadcast %12 : vector<128x1xi32> to vector<128x24xi32>
    %14 = arith.cmpi eq, %13, %5 : vector<128x24xi32>
    %15 = arith.extui %14 : vector<128x24xi1> to vector<128x24xi32>
    %16 = arith.sitofp %15 : vector<128x24xi32> to vector<128x24xf32>
    %17 = arith.truncf %16 : vector<128x24xf32> to vector<128x24xbf16>
    %c0_5 = arith.constant 0 : index
    %c0_6 = arith.constant 0 : index
    %18 = vector.load %arg22[%c0_5, %c0_6] : memref<24x32xf32, #tpu.memory_space<vmem>>, vector<24x32xf32>
    %19 = arith.truncf %18 : vector<24x32xf32> to vector<24x32xbf16>
    %cst = arith.constant dense<0.000000e+00> : vector<128x32xf32>
    %20 = tpu.matmul %11, %19, %cst {dimension_numbers = #tpu.dot_dimension_numbers<[1], [0], [0], [1], [0, 0, 1, 1], [], []>} : vector<128x24xbf16>, vector<24x32xbf16>, vector<128x32xf32> -> vector<128x32xf32>
    %cst_7 = arith.constant dense<0.000000e+00> : vector<128x32xf32>
    %21 = tpu.matmul %17, %19, %cst_7 {dimension_numbers = #tpu.dot_dimension_numbers<[1], [0], [0], [1], [0, 0, 1, 1], [], []>} : vector<128x24xbf16>, vector<24x32xbf16>, vector<128x32xf32> -> vector<128x32xf32>
    %c4_i32 = arith.constant 4 : i32
    %22 = arith.cmpi slt, %arg0, %c4_i32 : i32
    %23 = arith.extui %22 : i1 to i32
    %c0_i32_8 = arith.constant 0 : i32
    %24 = arith.cmpi ne, %23, %c0_i32_8 : i32
    scf.if %24 {
      %c0_11 = arith.constant 0 : index
      %c0_12 = arith.constant 0 : index
      %28 = vector.load %arg6[%c0_11, %c0_12] : memref<128x8xbf16, #tpu.memory_space<vmem>>, vector<128x8xbf16>
      %c0_13 = arith.constant 0 : index
      %c0_14 = arith.constant 0 : index
      %29 = vector.load %arg9[%c0_13, %c0_14] : memref<8x32xbf16, #tpu.memory_space<vmem>>, vector<8x32xbf16>
      %cst_15 = arith.constant dense<0.000000e+00> : vector<128x32xf32>
      %30 = tpu.matmul %28, %29, %cst_15 {dimension_numbers = #tpu.dot_dimension_numbers<[1], [0], [0], [1], [0, 0, 1, 1], [], []>} : vector<128x8xbf16>, vector<8x32xbf16>, vector<128x32xf32> -> vector<128x32xf32>
      %c0_16 = arith.constant 0 : index
      %c0_17 = arith.constant 0 : index
      %31 = vector.load %arg10[%c0_16, %c0_17] : memref<1x32xf32, #tpu.memory_space<vmem>>, vector<1x32xf32>
      %32 = vector.broadcast %31 : vector<1x32xf32> to vector<128x32xf32>
      %33 = arith.addf %30, %32 : vector<128x32xf32>
      %34 = arith.addf %20, %21 : vector<128x32xf32>
      %35 = arith.truncf %34 : vector<128x32xf32> to vector<128x32xbf16>
      %c0_18 = arith.constant 0 : index
      %c0_19 = arith.constant 0 : index
      %c0_20 = arith.constant 0 : index
      %36 = vector.load %arg11[%c0_18, %c0_19, %c0_20] : memref<1x32x32xbf16, #tpu.memory_space<vmem>>, vector<1x32x32xbf16>
      %37 = vector.shape_cast %36 : vector<1x32x32xbf16> to vector<32x32xbf16>
      %cst_21 = arith.constant dense<0.000000e+00> : vector<128x32xf32>
      %38 = tpu.matmul %35, %37, %cst_21 {dimension_numbers = #tpu.dot_dimension_numbers<[1], [0], [0], [1], [0, 0, 1, 1], [], []>} : vector<128x32xbf16>, vector<32x32xbf16>, vector<128x32xf32> -> vector<128x32xf32>
      %39 = arith.truncf %33 : vector<128x32xf32> to vector<128x32xbf16>
      %c0_22 = arith.constant 0 : index
      %c0_23 = arith.constant 0 : index
      %c0_24 = arith.constant 0 : index
      %40 = vector.load %arg12[%c0_22, %c0_23, %c0_24] : memref<1x32x32xbf16, #tpu.memory_space<vmem>>, vector<1x32x32xbf16>
      %41 = vector.shape_cast %40 : vector<1x32x32xbf16> to vector<32x32xbf16>
      %cst_25 = arith.constant dense<0.000000e+00> : vector<128x32xf32>
      %42 = tpu.matmul %39, %41, %cst_25 {dimension_numbers = #tpu.dot_dimension_numbers<[1], [0], [0], [1], [0, 0, 1, 1], [], []>} : vector<128x32xbf16>, vector<32x32xbf16>, vector<128x32xf32> -> vector<128x32xf32>
      %43 = arith.addf %38, %42 : vector<128x32xf32>
      %c0_26 = arith.constant 0 : index
      %c0_27 = arith.constant 0 : index
      %c0_28 = arith.constant 0 : index
      %44 = vector.load %arg13[%c0_26, %c0_27, %c0_28] : memref<1x1x32xf32, #tpu.memory_space<vmem>>, vector<1x1x32xf32>
      %45 = vector.shape_cast %44 : vector<1x1x32xf32> to vector<1x32xf32>
      %46 = vector.broadcast %45 : vector<1x32xf32> to vector<128x32xf32>
      %47 = arith.addf %43, %46 : vector<128x32xf32>
      %cst_29 = arith.constant 0.000000e+00 : f32
      %48 = vector.broadcast %cst_29 : f32 to vector<128x32xf32>
      %49 = arith.maximumf %47, %48 : vector<128x32xf32>
      %50 = arith.truncf %49 : vector<128x32xf32> to vector<128x32xbf16>
      %c0_30 = arith.constant 0 : index
      %c0_31 = arith.constant 0 : index
      %c0_32 = arith.constant 0 : index
      %51 = vector.load %arg14[%c0_30, %c0_31, %c0_32] : memref<1x32x32xbf16, #tpu.memory_space<vmem>>, vector<1x32x32xbf16>
      %52 = vector.shape_cast %51 : vector<1x32x32xbf16> to vector<32x32xbf16>
      %cst_33 = arith.constant dense<0.000000e+00> : vector<128x32xf32>
      %53 = tpu.matmul %50, %52, %cst_33 {dimension_numbers = #tpu.dot_dimension_numbers<[1], [0], [0], [1], [0, 0, 1, 1], [], []>} : vector<128x32xbf16>, vector<32x32xbf16>, vector<128x32xf32> -> vector<128x32xf32>
      %c0_34 = arith.constant 0 : index
      %c0_35 = arith.constant 0 : index
      %c0_36 = arith.constant 0 : index
      %54 = vector.load %arg15[%c0_34, %c0_35, %c0_36] : memref<1x1x32xf32, #tpu.memory_space<vmem>>, vector<1x1x32xf32>
      %55 = vector.shape_cast %54 : vector<1x1x32xf32> to vector<1x32xf32>
      %56 = vector.broadcast %55 : vector<1x32xf32> to vector<128x32xf32>
      %57 = arith.addf %53, %56 : vector<128x32xf32>
      %58 = tpu.iota {dimensions = array<i32: 0>} : vector<24x128xi32>
      %c0_37 = arith.constant 0 : index
      %c0_38 = arith.constant 0 : index
      %c0_39 = arith.constant 0 : index
      %59 = vector.load %arg4[%c0_37, %c0_38, %c0_39] : memref<1x1x128xi32, #tpu.memory_space<vmem>>, vector<1x1x128xi32>
      %60 = vector.shape_cast %59 : vector<1x1x128xi32> to vector<1x128xi32>
      %61 = vector.broadcast %60 : vector<1x128xi32> to vector<24x128xi32>
      %62 = arith.cmpi eq, %61, %58 : vector<24x128xi32>
      %63 = arith.extui %62 : vector<24x128xi1> to vector<24x128xi32>
      %64 = arith.sitofp %63 : vector<24x128xi32> to vector<24x128xf32>
      %65 = arith.truncf %64 : vector<24x128xf32> to vector<24x128xbf16>
      %66 = arith.truncf %57 : vector<128x32xf32> to vector<128x32xbf16>
      %cst_40 = arith.constant dense<0.000000e+00> : vector<24x32xf32>
      %67 = tpu.matmul %65, %66, %cst_40 {dimension_numbers = #tpu.dot_dimension_numbers<[1], [0], [0], [1], [0, 0, 1, 1], [], []>} : vector<24x128xbf16>, vector<128x32xbf16>, vector<24x32xf32> -> vector<24x32xf32>
      %c0_i32_41 = arith.constant 0 : i32
      %68 = arith.cmpi eq, %arg1, %c0_i32_41 : i32
      %69 = arith.extui %68 : i1 to i32
      %c0_i32_42 = arith.constant 0 : i32
      %70 = arith.cmpi ne, %69, %c0_i32_42 : i32
      scf.if %70 {
        %cst_48 = arith.constant 0.000000e+00 : f32
        %77 = vector.broadcast %cst_48 : f32 to vector<24x32xf32>
        %c0_49 = arith.constant 0 : index
        %c0_50 = arith.constant 0 : index
        %78 = vector.load %arg23[%c0_49, %c0_50] : memref<24x32xf32, #tpu.memory_space<vmem>>, vector<24x32xf32>
        tpu.vector_store %arg23[%c0_49, %c0_50], %77 {strides = array<i32>} : memref<24x32xf32, #tpu.memory_space<vmem>>, vector<24x32xf32>,
      } else {
      }
      %c0_43 = arith.constant 0 : index
      %c0_44 = arith.constant 0 : index
      %71 = vector.load %arg23[%c0_43, %c0_44] : memref<24x32xf32, #tpu.memory_space<vmem>>, vector<24x32xf32>
      %72 = arith.addf %71, %67 : vector<24x32xf32>
      %c0_45 = arith.constant 0 : index
      %c0_46 = arith.constant 0 : index
      %73 = vector.load %arg23[%c0_45, %c0_46] : memref<24x32xf32, #tpu.memory_space<vmem>>, vector<24x32xf32>
      tpu.vector_store %arg23[%c0_45, %c0_46], %72 {strides = array<i32>} : memref<24x32xf32, #tpu.memory_space<vmem>>, vector<24x32xf32>,
      %c2_i32 = arith.constant 2 : i32
      %74 = arith.cmpi eq, %arg1, %c2_i32 : i32
      %75 = arith.extui %74 : i1 to i32
      %c0_i32_47 = arith.constant 0 : i32
      %76 = arith.cmpi ne, %75, %c0_i32_47 : i32
      scf.if %76 {
        %c0_48 = arith.constant 0 : index
        %c0_49 = arith.constant 0 : index
        %77 = vector.load %arg23[%c0_48, %c0_49] : memref<24x32xf32, #tpu.memory_space<vmem>>, vector<24x32xf32>
        %c0_50 = arith.constant 0 : index
        %c0_51 = arith.constant 0 : index
        %78 = vector.load %arg22[%c0_50, %c0_51] : memref<24x32xf32, #tpu.memory_space<vmem>>, vector<24x32xf32>
        tpu.vector_store %arg22[%c0_50, %c0_51], %77 {strides = array<i32>} : memref<24x32xf32, #tpu.memory_space<vmem>>, vector<24x32xf32>,
      } else {
      }
    } else {
    }
    %c4_i32_9 = arith.constant 4 : i32
    %25 = arith.cmpi eq, %arg0, %c4_i32_9 : i32
    %26 = arith.extui %25 : i1 to i32
    %c0_i32_10 = arith.constant 0 : i32
    %27 = arith.cmpi ne, %26, %c0_i32_10 : i32
    scf.if %27 {
      %28 = arith.truncf %20 : vector<128x32xf32> to vector<128x32xbf16>
      %c0_11 = arith.constant 0 : index
      %c0_12 = arith.constant 0 : index
      %29 = vector.load %arg16[%c0_11, %c0_12] : memref<32x32xbf16, #tpu.memory_space<vmem>>, vector<32x32xbf16>
      %cst_13 = arith.constant dense<0.000000e+00> : vector<128x32xf32>
      %30 = tpu.matmul %28, %29, %cst_13 {dimension_numbers = #tpu.dot_dimension_numbers<[1], [0], [0], [1], [0, 0, 1, 1], [], []>} : vector<128x32xbf16>, vector<32x32xbf16>, vector<128x32xf32> -> vector<128x32xf32>
      %31 = arith.truncf %21 : vector<128x32xf32> to vector<128x32xbf16>
      %c0_14 = arith.constant 0 : index
      %c0_15 = arith.constant 0 : index
      %32 = vector.load %arg17[%c0_14, %c0_15] : memref<32x32xbf16, #tpu.memory_space<vmem>>, vector<32x32xbf16>
      %cst_16 = arith.constant dense<0.000000e+00> : vector<128x32xf32>
      %33 = tpu.matmul %31, %32, %cst_16 {dimension_numbers = #tpu.dot_dimension_numbers<[1], [0], [0], [1], [0, 0, 1, 1], [], []>} : vector<128x32xbf16>, vector<32x32xbf16>, vector<128x32xf32> -> vector<128x32xf32>
      %34 = arith.addf %30, %33 : vector<128x32xf32>
      %c0_17 = arith.constant 0 : index
      %c0_18 = arith.constant 0 : index
      %35 = vector.load %arg18[%c0_17, %c0_18] : memref<1x32xf32, #tpu.memory_space<vmem>>, vector<1x32xf32>
      %36 = vector.broadcast %35 : vector<1x32xf32> to vector<128x32xf32>
      %37 = arith.addf %34, %36 : vector<128x32xf32>
      %cst_19 = arith.constant 0.000000e+00 : f32
      %38 = vector.broadcast %cst_19 : f32 to vector<128x32xf32>
      %39 = arith.maximumf %37, %38 : vector<128x32xf32>
      %c0_20 = arith.constant 0 : index
      %c0_21 = arith.constant 0 : index
      %40 = vector.load %arg19[%c0_20, %c0_21] : memref<1x32xbf16, #tpu.memory_space<vmem>>, vector<1x32xbf16>
      %41 = arith.truncf %39 : vector<128x32xf32> to vector<128x32xbf16>
      %cst_22 = arith.constant dense<0.000000e+00> : vector<1x128xf32>
      %42 = tpu.matmul %40, %41, %cst_22 {dimension_numbers = #tpu.dot_dimension_numbers<[1], [1], [0], [0], [0, 0, 1, 0], [], []>} : vector<1x32xbf16>, vector<128x32xbf16>, vector<1x128xf32> -> vector<1x128xf32>
      %c0_23 = arith.constant 0 : index
      %c0_24 = arith.constant 0 : index
      %43 = memref.load %arg20[%c0_23, %c0_24] : memref<1x1xf32, #tpu.memory_space<smem>>
      %44 = vector.broadcast %43 : f32 to vector<1x128xf32>
      %45 = arith.addf %42, %44 : vector<1x128xf32>
      %c0_25 = arith.constant 0 : index
      %c0_26 = arith.constant 0 : index
      %46 = vector.load %arg21[%c0_25, %c0_26] : memref<1x128xf32, #tpu.memory_space<vmem>>, vector<1x128xf32>
      tpu.vector_store %arg21[%c0_25, %c0_26], %45 {strides = array<i32>} : memref<1x128xf32, #tpu.memory_space<vmem>>, vector<1x128xf32>,
    } else {
    }
    return
  }
  func.func @transform_0(%arg0: i32, %arg1: i32) -> (i32, i32) {
    %c0_i32 = arith.constant 0 : i32
    %c0_i32_0 = arith.constant 0 : i32
    return %arg1, %c0_i32 : i32, i32
  }
  func.func @transform_1(%arg0: i32, %arg1: i32) -> (i32, i32) {
    %c0_i32 = arith.constant 0 : i32
    %c0_i32_0 = arith.constant 0 : i32
    return %arg1, %c0_i32 : i32, i32
  }
  func.func @transform_2(%arg0: i32, %arg1: i32) -> (i32, i32, i32) {
    %c0_i32 = arith.constant 0 : i32
    %c0_i32_0 = arith.constant 0 : i32
    %c0_i32_1 = arith.constant 0 : i32
    return %arg1, %c0_i32, %c0_i32_0 : i32, i32, i32
  }
  func.func @transform_3(%arg0: i32, %arg1: i32) -> (i32, i32) {
    %c0_i32 = arith.constant 0 : i32
    %c0_i32_0 = arith.constant 0 : i32
    %c0_i32_1 = arith.constant 0 : i32
    return %c0_i32, %c0_i32_0 : i32, i32
  }
  func.func @transform_4(%arg0: i32, %arg1: i32) -> (i32, i32) {
    %c0_i32 = arith.constant 0 : i32
    %c0_i32_0 = arith.constant 0 : i32
    return %arg1, %c0_i32 : i32, i32
  }
  func.func @transform_5(%arg0: i32, %arg1: i32) -> (i32, i32) {
    %c0_i32 = arith.constant 0 : i32
    %c0_i32_0 = arith.constant 0 : i32
    %c0_i32_1 = arith.constant 0 : i32
    return %c0_i32, %c0_i32_0 : i32, i32
  }
  func.func @transform_6(%arg0: i32, %arg1: i32) -> (i32, i32) {
    %c0_i32 = arith.constant 0 : i32
    %c0_i32_0 = arith.constant 0 : i32
    %c0_i32_1 = arith.constant 0 : i32
    return %c0_i32, %c0_i32_0 : i32, i32
  }
  func.func @transform_7(%arg0: i32, %arg1: i32) -> (i32, i32) {
    %c0_i32 = arith.constant 0 : i32
    %c0_i32_0 = arith.constant 0 : i32
    %c0_i32_1 = arith.constant 0 : i32
    return %c0_i32, %c0_i32_0 : i32, i32
  }
  func.func @transform_8(%arg0: i32, %arg1: i32) -> (i32, i32) {
    %c0_i32 = arith.constant 0 : i32
    %c0_i32_0 = arith.constant 0 : i32
    %c0_i32_1 = arith.constant 0 : i32
    return %c0_i32, %c0_i32_0 : i32, i32
  }
  func.func @transform_9(%arg0: i32, %arg1: i32) -> (i32, i32, i32) {
    %c3_i32 = arith.constant 3 : i32
    %0 = arith.minsi %arg0, %c3_i32 : i32
    %c0_i32 = arith.constant 0 : i32
    %c0_i32_0 = arith.constant 0 : i32
    %c0_i32_1 = arith.constant 0 : i32
    return %0, %c0_i32, %c0_i32_0 : i32, i32, i32
  }
  func.func @transform_10(%arg0: i32, %arg1: i32) -> (i32, i32, i32) {
    %c3_i32 = arith.constant 3 : i32
    %0 = arith.minsi %arg0, %c3_i32 : i32
    %c0_i32 = arith.constant 0 : i32
    %c0_i32_0 = arith.constant 0 : i32
    %c0_i32_1 = arith.constant 0 : i32
    return %0, %c0_i32, %c0_i32_0 : i32, i32, i32
  }
  func.func @transform_11(%arg0: i32, %arg1: i32) -> (i32, i32, i32) {
    %c3_i32 = arith.constant 3 : i32
    %0 = arith.minsi %arg0, %c3_i32 : i32
    %c0_i32 = arith.constant 0 : i32
    %c0_i32_0 = arith.constant 0 : i32
    %c0_i32_1 = arith.constant 0 : i32
    return %0, %c0_i32, %c0_i32_0 : i32, i32, i32
  }
  func.func @transform_12(%arg0: i32, %arg1: i32) -> (i32, i32, i32) {
    %c3_i32 = arith.constant 3 : i32
    %0 = arith.minsi %arg0, %c3_i32 : i32
    %c0_i32 = arith.constant 0 : i32
    %c0_i32_0 = arith.constant 0 : i32
    %c0_i32_1 = arith.constant 0 : i32
    return %0, %c0_i32, %c0_i32_0 : i32, i32, i32
  }
  func.func @transform_13(%arg0: i32, %arg1: i32) -> (i32, i32, i32) {
    %c3_i32 = arith.constant 3 : i32
    %0 = arith.minsi %arg0, %c3_i32 : i32
    %c0_i32 = arith.constant 0 : i32
    %c0_i32_0 = arith.constant 0 : i32
    %c0_i32_1 = arith.constant 0 : i32
    return %0, %c0_i32, %c0_i32_0 : i32, i32, i32
  }
  func.func @transform_14(%arg0: i32, %arg1: i32) -> (i32, i32) {
    %c0_i32 = arith.constant 0 : i32
    %c0_i32_0 = arith.constant 0 : i32
    %c0_i32_1 = arith.constant 0 : i32
    return %c0_i32, %c0_i32_0 : i32, i32
  }
  func.func @transform_15(%arg0: i32, %arg1: i32) -> (i32, i32) {
    %c0_i32 = arith.constant 0 : i32
    %c0_i32_0 = arith.constant 0 : i32
    %c0_i32_1 = arith.constant 0 : i32
    return %c0_i32, %c0_i32_0 : i32, i32
  }
  func.func @transform_16(%arg0: i32, %arg1: i32) -> (i32, i32) {
    %c0_i32 = arith.constant 0 : i32
    %c0_i32_0 = arith.constant 0 : i32
    %c0_i32_1 = arith.constant 0 : i32
    return %c0_i32, %c0_i32_0 : i32, i32
  }
  func.func @transform_17(%arg0: i32, %arg1: i32) -> (i32, i32) {
    %c0_i32 = arith.constant 0 : i32
    %c0_i32_0 = arith.constant 0 : i32
    %c0_i32_1 = arith.constant 0 : i32
    return %c0_i32, %c0_i32_0 : i32, i32
  }
  func.func @transform_18(%arg0: i32, %arg1: i32) -> (i32, i32) {
    %c0_i32 = arith.constant 0 : i32
    %c0_i32_0 = arith.constant 0 : i32
    %c0_i32_1 = arith.constant 0 : i32
    return %c0_i32, %c0_i32_0 : i32, i32
  }
  func.func @transform_19(%arg0: i32, %arg1: i32) -> (i32, i32) {
    %c0_i32 = arith.constant 0 : i32
    %c0_i32_0 = arith.constant 0 : i32
    return %c0_i32, %arg1 : i32, i32
  }
}

</mosaic_0001>

<bundles_post_ra>
// kernel: tpu_custom_call.1
= control target key start
LH: loop header
LB: loop body
LE: loop exit
PB: predicated region body
PF: predicated region fallthrough
CT: control target
= control target key end

     0   :  { %s4197_s0 = inlined_call_operand.vmem [shape: s32[384,1], index: 0, kind: input, shape index: {}]   ;;  %s4198_s1 = inlined_call_operand.vmem [shape: s32[384,1], index: 1, kind: input, shape index: {}]   ;;  %s4199_s2 = inlined_call_operand.vmem [shape: s32[3,1,128], index: 2, kind: input, shape index: {}]   ;;  %s4200_s3 = inlined_call_operand.vmem [shape: bf16[24,8], index: 3, kind: input, shape index: {}]   ;;  %s4201_s4 = inlined_call_operand.vmem [shape: bf16[384,8], index: 4, kind: input, shape index: {}]   ;;  %s4202_s5 = inlined_call_operand.vmem [shape: bf16[8,32], index: 5, kind: input, shape index: {}]   ;;  %s4203_s6 = inlined_call_operand.vmem [shape: f32[1,32], index: 6, kind: input, shape index: {}]   ;;  %s4204_s7 = inlined_call_operand.vmem [shape: bf16[8,32], index: 7, kind: input, shape index: {}]   ;;  %s4205_s8 = inlined_call_operand.vmem [shape: f32[1,32], index: 8, kind: input, shape index: {}]   ;;  %s4206_s9 = inlined_call_operand.vmem [shape: bf16[4,32,32], index: 9, kind: input, shape index: {}]   ;;  %s4207_s10 = inlined_call_operand.vmem [shape: bf16[4,32,32], index: 10, kind: input, shape index: {}]   ;;  %s4208_s11 = inlined_call_operand.vmem [shape: f32[4,1,32], index: 11, kind: input, shape index: {}]   ;;  %s4209_s12 = inlined_call_operand.vmem [shape: bf16[4,32,32], index: 12, kind: input, shape index: {}]   ;;  %s4210_s13 = inlined_call_operand.vmem [shape: f32[4,1,32], index: 13, kind: input, shape index: {}]   ;;  %s4211_s14 = inlined_call_operand.vmem [shape: bf16[32,32], index: 14, kind: input, shape index: {}]   ;;  %s4212_s15 = inlined_call_operand.vmem [shape: bf16[32,32], index: 15, kind: input, shape index: {}]   ;;  %s4213_s16 = inlined_call_operand.vmem [shape: f32[1,32], index: 16, kind: input, shape index: {}]   ;;  %s4214_s17 = inlined_call_operand.vmem [shape: bf16[1,32], index: 17, kind: input, shape index: {}]   ;;  %s4215_s18 = inlined_call_operand.<no memory space> [shape: f32[1,1], index: 18, kind: input, shape index: {}]   ;;  %s4216_s19 = inlined_call_operand.hbm [shape: f32[1,384], index: 19, kind: output, shape index: {}]  }
   0x1   :  { %4232 = sst [smem:[#allocation19_spill]] %s4197_s0 }
   0x2   :  { %4233 = sst [smem:[#allocation20_spill]] %s4198_s1 }
   0x3   :  { %4234 = sst [smem:[#allocation21_spill]] %s4199_s2 }
   0x4   :  { %4235 = sst [smem:[#allocation22_spill]] %s4200_s3 }
   0x5   :  { %4236 = sst [smem:[#allocation23_spill]] %s4201_s4 }
   0x6   :  { %4237 = sst [smem:[#allocation24_spill]] %s4205_s8 }
   0x7   :  { %4238 = sst [smem:[#allocation25_spill]] %s4206_s9 }
   0x8   :  { %4239 = sst [smem:[#allocation26_spill]] %s4211_s14 }
   0x9   :  { %4240 = sst [smem:[#allocation27_spill]] %s4212_s15 }
   0xa   :  { %4241 = sst [smem:[#allocation28_spill]] %s4213_s16 }
   0xb   :  { %4242 = sst [smem:[#allocation29_spill]] %s4214_s17 }
   0xc   :  { %4243 = sst [smem:[#allocation30_spill]] %s4216_s19 }
   0xd   :  { %24 = sst [smem:[#allocation4]] %s4215_s18 }
   0xe   :  { %25 = vsyncpa [#allocation6], 0 }
   0xf   :  { %27 = vsyncpa [#allocation6 + $0x1], 0  ;;  %s3605_s20 = smov 0   ;;  %s3607_s21 = smov 0  }
  0x10   :  { %s3609_s1 = smov 0   ;;  %s3611_s22 = smov 0  }
  0x11   :  { %s3613_s2 = smov 0   ;;  %s3615_s23 = smov 0  }
  0x12   :  { %s3617_s24 = smov 0   ;;  %s3619_s25 = smov 0  }
  0x13 LB: > { %4244 = sst [smem:[#allocation8_spill]] %s3465_s20  ;;  %s2785_s18 = sadd.s32 4294967295, %s3493_s25   ;;  %s3493_s25 = sphi %s3619_s25, %s33_s25   ;;  %s3489_s24 = sphi %s3617_s24, %s4286_s24   ;;  %s3485_s23 = sphi %s3615_s23, %s4285_s23   ;;  %s3481_s2 = sphi %s3613_s2, %s4284_s2   ;;  %s3477_s22 = sphi %s3611_s22, %s4283_s22   ;;  %s3473_s1 = sphi %s3609_s1, %s4282_s1   ;;  %s3469_s21 = sphi %s3607_s21, %s4288_s21   ;;  %s3465_s20 = sphi %s3605_s20, %s4287_s20  }
  0x14   : > { %4245 = sst [smem:[#allocation9_spill]] %s3473_s1  ;;  %s2786_s3 = sadd.s32 4294967294, %s3493_s25  }
  0x15   : > { %4246 = sst [smem:[#allocation10_spill]] %s3485_s23  ;;  %s42_s26 = sadd.s32 1, %s3485_s23 }
  0x16   : > { %4247 = sst [smem:[#allocation11_spill]] %s3489_s24  ;;  %s45_s27 = sadd.s32 1, %s3489_s24 }
  0x17   : > { %4248 = sst [smem:[#allocation12_spill]] %s3493_s25  ;;  %p43_p0 = scmp.ge.s32.totalorder %s42_s26, 3 }
  0x18   : > { %s516_s28 = sadd.s32 1, %s3473_s1  ;;  %p526_p1 = scmp.ne.s32.totalorder %s3473_s1, %s3469_s21 }
  0x19   : > { %p527_p2 = scmp.eq.s32.totalorder %s2785_s18, 14  ;;  %s4290_s26 = smov (%p43_p0, %s42_s26), 0 }
  0x1a   : > { %4249 = sst [smem:[#allocation13_spill]] %s4290_s26  ;;  %s4292_s27 = smov (!%p43_p0, %s45_s27), %s3489_s24 }
  0x1b   : > { %s513_s29 = ssub.s32 %s3485_s23, %s4290_s26  ;;  %p3657_p3 = por %p527_p2, %p526_p1 }
  0x1c   : > { %p47_p4 = scmp.ge.s32.totalorder %s4292_s27, 5  ;;  %p514_p5 = scmp.eq.s32.totalorder %s513_s29, 0 }
  0x1d   : > { %s4250_s0 = scalar_select %p3657_p3, 1, 0 }
  0x1e   : > { %p532_p6 = scmp.ne.s32.totalorder %s3469_s21, %s3465_s20  ;;  %p533_p7 = scmp.eq.s32.totalorder %s2786_s3, 14 }
  0x1f   : > { %4251 = sst [smem:[#allocation14_spill]] %s4250_s0  ;;  %s4294_s27 = smov (%p47_p4, %s4292_s27), 0 }
  0x20   : > { %4252 = sst [smem:[#allocation15_spill]] %s4294_s27  ;;  %p3668_p8 = por %p533_p7, %p532_p6 }
  0x21   : > { %s3666_s30 = scalar_select %p514_p5, %s3473_s1, %s516_s28  }
  0x22   : > { %s4254_s19 = scalar_select %p3668_p8, 1, 0 }
  0x23   : > { %4253 = sst [smem:[#allocation16_spill]] %s3666_s30  ;;  %p2789_p9 = scmp.ge.s32.totalorder %s3493_s25, 1 }
  0x24   : > { %4255 = sst [smem:[#allocation17_spill]] %s4254_s19  ;;  %p670_p10 = scmp.lt.s32.totalorder %s3493_s25, 16 }
  0x26   : > { %p671_p11 = pnand %p2789_p9, %p670_p10 }
  0x28   : > { %674 = sbr.rel (%p671_p11) target bundleno = 2196 (0x894), region = 96 }
  0x2f   : > { %s3676_s3 = sshll.u32 %s3477_s22, 4  ;;  %p781_p13 = scmp.lt.s32.totalorder %s3477_s22, 2 }
  0x30   : > { %4256 = sst [smem:[#allocation18_spill]] %s3676_s3  ;;  %p770_p12 = scmp.lt.s32.totalorder %s3676_s3, 47 }
  0x31   : > { %p790_p0 = scmp.lt.s32.totalorder %s3481_s2, 3  ;;  %s4257_s30 = sld [smem:[#allocation19_spill]] }
  0x32   : > { %s771_s28 = scalar_select %p770_p12, %s3676_s3, 47 }
  0x33   : > { %s3683_s29 = scalar_select %p781_p13, %s3477_s22, 2 }
  0x34   : > { %s2791_s27 = sshll.u32 %s771_s28, 3  ;;  %s2795_s26 = sshll.u32 %s771_s28, 2 }
  0x35   : > { %s4258_s20 = sld [smem:[#allocation20_spill]]  ;;  %s4260_s4 = sld [smem:[#allocation23_spill]] }
  0x36   : > { %s791_s28 = scalar_select %p790_p0, %s3481_s2, 3 }
  0x37   : > { %s3688_s1 = scalar_lea.vmem %s4257_s30, %s2791_s27  ;;  %p832_p1 = scmp.eq.s32.totalorder %s3481_s2, 0 }
  0x38   : > { %p833_p2 = scmp.eq.s32.totalorder %s3477_s22, 0  ;;  %s4296_s28 = smov (!%p790_p0, %s791_s28), 3 }
  0x39   : > { %s2956_s19 = sshll.u32 %s4296_s28, 4  ;;  %s4261_s9 = sld [smem:[#allocation25_spill]] }
  0x3a   : > { %p834_p4 = pnand %p833_p2, %p832_p1  ;;  %s3727_s18 = scalar_lea.vmem %s4209_s12, %s2956_s19 }
  0x3b   : > { %s3693_s25 = scalar_lea.vmem %s4258_s20, %s2791_s27  ;;  %s3702_s8 = scalar_lea.vmem %s4260_s4, %s2795_s26  ;;  %v841_v0 = vld [vmem:[%s4202_s5] sm:$0xf] (!%p834_p4)  ;;  %vm864_vm0 = vcmask (!%p834_p4), 1043456   ;;  %vm857_vm1 = vcmask (!%p834_p4), 64512   ;;  %vm916_vm2 = vcmask (!%p834_p4), 261120  }
  0x3c   : > { %s3722_s27 = scalar_lea.vmem %s4207_s10, %s2956_s19  ;;  %s828_s20 = scalar_lea.vmem %s4210_s13, %s4296_s28  ;;  %3296 = vmatprep.subr.msk.bf16.mxu0 (!%p834_p4), %vm864_vm0, %v841_v0  ;;  %v866_v2 = vsel (!%p834_p4), %vm864_vm0, %v841_v0, 0  ;;  %v2817_v4 = vld [vmem:[%s4203_s6] ss:$0 sm:$0xff] (!%p834_p4) }
  0x3d   : > { %s4262_s23 = sand.u32 1, %s3469_s21   ;;  %837 = sbr.rel (%p834_p4) target bundleno = 289 (0x121), region = 100  ;;  %3061 = vmatpush3.bf16.msra.mxu0 (!%p834_p4), %v866_v2 }
  0x3e   : > { %s3735_s17 = scalar_lea.vmem [#allocation5], %s4262_s23 }
  0x3f   : > { %s3717_s14 = scalar_lea.vmem %s4261_s9, %s2956_s19  ;;  %s4263_s9 = sld [smem:[#allocation22_spill]] (!%p834_p4) }
  0x45   : > { %v3377_v1 = vld [vmem:[%s4263_s9] sm:$0xff]   ;;  %v3378_v3 = vld [vmem:[%s4263_s9 + $0x8] ss:$0 sps:$4 sm:$0xff]  }
  0x46   : > { %3062 = vmatprep.mubr.msk.bf16.mxu0 %vm857_vm1, %v3377_v1 }
  0x47   : > { %3063 = vmatmul.mubr.msk.bf16.vlgmr.msra.gmra.mrb[0].mxu0 %vm857_vm1, %v3378_v3 }
 0x11a   : > { %v3064_v5 = vpop.f32.mrb[0].mxu0 }
 0x11b   : > { %v911_v6 = vadd.f32 %v3064_v5, %v2817_v4  ;;  %v902_v7 = vpop.f32.mrb[1].mxu0 }
 0x11c   : > { %v903_v8 = vadd.f32 %v2817_v4, %v902_v7  ;;  %v3065_v9 = vpop.f32.mrb[2].mxu0 }
 0x11d   : > { %919 = vst.msk [vmem:[#allocation2 + $0x10] sm:$0xff] %vm916_vm2, %v911_v6  ;;  %v905_v10 = vpop.f32.mrb[3].mxu0 }
 0x11e   : > { %917 = vst.msk [vmem:[#allocation2] sm:$0xff] %vm916_vm2, %v903_v8  ;;  %v906_v11 = vadd.f32 %v2817_v4, %v905_v10 }
 0x120   : > { %918 = vst.msk [vmem:[#allocation2 + $0x8] sm:$0xff] %vm916_vm2, %v906_v11 }
 0x121 PF: > { %v1042_v12 = vld [vmem:[%s3693_s25] sm:$0xff]  ;;  %v3495_v14 = vmov 0   ;;  %v1043_v15 = vld [vmem:[%s3693_s25 + $0x8] sm:$0xff]  ;;  %v925_v17 = vld [vmem:[%s3688_s1 + $0x18] sm:$0xff]  ;;  %vm1192_vm3 = vcmask 1043456   ;;  %v920_v51 = vlaneseq  ;;  %vm1167_vm8 = vcmask 195584  }
 0x122   : > { %v922_v13 = vld [vmem:[%s3688_s1] sm:$0xff]  ;;  %3380 = vset.pattern.permute.xlu1 %v3495_v14  ;;  %3379 = vset.pattern.permute.xlu0 %v3495_v14  ;;  %v923_v16 = vld [vmem:[%s3688_s1 + $0x8] sm:$0xff]  ;;  %v924_v18 = vld [vmem:[%s3688_s1 + $0x10] sm:$0xff]  ;;  %v3496_v57 = vmov 0.0   ;;  %p2870_p5 = scmp.ge.s32.totalorder %s3481_s2, 4 }
 0x123   : > { %1059 = vperm.xlu1 %3380, %v1042_v12   ;;  %939 = vperm.xlu0 %3379, %v922_v13   ;;  %v1045_v19 = vld [vmem:[%s3693_s25 + $0x18] sm:$0xff]  ;;  %v1044_v21 = vld [vmem:[%s3693_s25 + $0x10] sm:$0xff]  ;;  %v927_v26 = vld [vmem:[%s3688_s1 + $0x28] sm:$0xff]  ;;  %v3785_v52 = vand.u32 127, %v920_v51  ;;  %s4264_s23 = sld [smem:[#allocation24_spill]] (!%p2870_p5)  ;;  %s4266_s15 = sld [smem:[#allocation21_spill]] (!%p2870_p5) }
 0x124   : > { %v1164_v23 = vld [vmem:[#allocation2 + $0x10] sm:$0xff]  ;;  %v926_v27 = vld [vmem:[%s3688_s1 + $0x20] sm:$0xff]  ;;  %v1047_v29 = vld [vmem:[%s3693_s25 + $0x28] sm:$0xff]  ;;  %p2928_p6 = scmp.ne.s32.totalorder (!%p2870_p5), %s3477_s22, 0 }
 0x125   : > { %v1162_v20 = vld [vmem:[#allocation2] sm:$0xff]  ;;  %v1166_v25 = vpack.c.bf16 %v1164_v23, %v1164_v23  ;;  %v929_v31 = vld [vmem:[%s3688_s1 + $0x38] sm:$0xff]  ;;  %v928_v32 = vld [vmem:[%s3688_s1 + $0x30] sm:$0xff] }
 0x126   : > { %v1046_v30 = vld [vmem:[%s3693_s25 + $0x20] sm:$0xff]  ;;  %v1049_v33 = vld [vmem:[%s3693_s25 + $0x38] sm:$0xff]  ;;  %v1048_v34 = vld [vmem:[%s3693_s25 + $0x30] sm:$0xff] }
 0x127   : > { %1062 = vperm.xlu1 %3380, %v1043_v15   ;;  %942 = vperm.xlu0 %3379, %v923_v16   ;;  %v1163_v22 = vld [vmem:[#allocation2 + $0x8] sm:$0xff]  ;;  %v1194_v28 = vsel %vm1192_vm3, %v1166_v25, 0  ;;  %v930_v36 = vld [vmem:[%s3688_s1 + $0x40] sm:$0xff]  ;;  %v933_v39 = vld [vmem:[%s3688_s1 + $0x58] sm:$0xff] }
 0x128   : > { %v1165_v24 = vpack.c.bf16 %v1163_v22, %v1162_v20  ;;  %v931_v35 = vld [vmem:[%s3688_s1 + $0x48] sm:$0xff]  ;;  %v1050_v38 = vld [vmem:[%s3693_s25 + $0x40] sm:$0xff]  ;;  %v932_v40 = vld [vmem:[%s3688_s1 + $0x50] sm:$0xff] }
 0x129   : > { %v1051_v37 = vld [vmem:[%s3693_s25 + $0x48] sm:$0xff]  ;;  %v1053_v41 = vld [vmem:[%s3693_s25 + $0x58] sm:$0xff]  ;;  %v1052_v42 = vld [vmem:[%s3693_s25 + $0x50] sm:$0xff]  ;;  %s4267_s26 = scalar_lea.vmem (!%p2870_p5), %s4266_s15, %s3683_s29 }
 0x12a   : > { %3066 = vmatprep.subr.bf16.mxu0 %v1165_v24  ;;  %3086 = vmatprep.subr.bf16.mxu1 %v1165_v24  ;;  %v935_v43 = vld [vmem:[%s3688_s1 + $0x68] sm:$0xff]  ;;  %v934_v44 = vld [vmem:[%s3688_s1 + $0x60] sm:$0xff]  ;;  %v937_v47 = vld [vmem:[%s3688_s1 + $0x78] sm:$0xff] }
 0x12b   : > { %948 = vperm.xlu1 %3380, %v925_v17   ;;  %945 = vperm.xlu0 %3379, %v924_v18   ;;  %v1055_v45 = vld [vmem:[%s3693_s25 + $0x68] sm:$0xff]  ;;  %v1054_v46 = vld [vmem:[%s3693_s25 + $0x60] sm:$0xff]  ;;  %v936_v48 = vld [vmem:[%s3688_s1 + $0x70] sm:$0xff] }
 0x12c   : > { %3067 = vmatpush3.bf16.msra.mxu0 %v1165_v24  ;;  %3087 = vmatpush3.bf16.msra.mxu1 %v1165_v24  ;;  %v1057_v49 = vld [vmem:[%s3693_s25 + $0x78] sm:$0xff]  ;;  %v1056_v50 = vld [vmem:[%s3693_s25 + $0x70] sm:$0xff] }
 0x12d   : > { %3297 = vmatprep.subr.msk.bf16.mxu0 %vm1192_vm3, %v1166_v25  ;;  %3298 = vmatprep.subr.msk.bf16.mxu1 %vm1192_vm3, %v1166_v25 }
 0x12f   : > { %1068 = vperm.xlu1 %3380, %v1045_v19   ;;  %1065 = vperm.xlu0 %3379, %v1044_v21  }
 0x130   : > { %3069 = vmatpush3.bf16.msra.mxu0 %v1194_v28  ;;  %3089 = vmatpush3.bf16.msra.mxu1 %v1194_v28 }
 0x133   : > { %954 = vperm.xlu1 %3380, %v927_v26   ;;  %951 = vperm.xlu0 %3379, %v926_v27  }
 0x137   : > { %1074 = vperm.xlu1 %3380, %v1047_v29   ;;  %1071 = vperm.xlu0 %3379, %v1046_v30  }
 0x13b   : > { %960 = vperm.xlu1 %3380, %v929_v31   ;;  %957 = vperm.xlu0 %3379, %v928_v32  }
 0x13f   : > { %1080 = vperm.xlu1 %3380, %v1049_v33   ;;  %1077 = vperm.xlu0 %3379, %v1048_v34  }
 0x143   : > { %966 = vperm.xlu1 %3380, %v931_v35   ;;  %963 = vperm.xlu0 %3379, %v930_v36  }
 0x147   : > { %1086 = vperm.xlu1 %3380, %v1051_v37   ;;  %1083 = vperm.xlu0 %3379, %v1050_v38  }
 0x14b   : > { %972 = vperm.xlu1 %3380, %v933_v39   ;;  %969 = vperm.xlu0 %3379, %v932_v40  }
 0x14f   : > { %1092 = vperm.xlu1 %3380, %v1053_v41   ;;  %1089 = vperm.xlu0 %3379, %v1052_v42  }
 0x153   : > { %978 = vperm.xlu1 %3380, %v935_v43   ;;  %975 = vperm.xlu0 %3379, %v934_v44  }
 0x157   : > { %1098 = vperm.xlu1 %3380, %v1055_v45   ;;  %1095 = vperm.xlu0 %3379, %v1054_v46  }
 0x15b   : > { %984 = vperm.xlu1 %3380, %v937_v47   ;;  %981 = vperm.xlu0 %3379, %v936_v48  }
 0x15f   : > { %1104 = vperm.xlu1 %3380, %v1057_v49   ;;  %1101 = vperm.xlu0 %3379, %v1056_v50  }
 0x1a2   : > { %v1060_v53 = vpop.permute.xlu1 %1059  ;;  %v940_v54 = vpop.permute.xlu0 %939 }
 0x1a3   : > { %vm1106_vm4 = vcmp.eq.s32.totalorder %v1060_v53, %v3785_v52  ;;  %vm986_vm5 = vcmp.eq.s32.totalorder %v940_v54, %v3785_v52 }
 0x1a4   : > { %v2838_v58 = vsel %vm1106_vm4, 1.0, %v3496_v57  ;;  %v2822_v59 = vsel %vm986_vm5, 1.0, %v3496_v57 }
 0x1a6   : > { %v1063_v55 = vpop.permute.xlu1 %1062  ;;  %v943_v56 = vpop.permute.xlu0 %942 }
 0x1a7   : > { %vm1107_vm6 = vcmp.eq.s32.totalorder %v1063_v55, %v3785_v52  ;;  %vm987_vm7 = vcmp.eq.s32.totalorder %v943_v56, %v3785_v52 }
 0x1a8   : > { %v2839_v60 = vsel %vm1107_vm6, 1.0, %v3496_v57  ;;  %v2823_v61 = vsel %vm987_vm7, 1.0, %v3496_v57 }
 0x1a9   : > { %v1034_v62 = vpack.c.bf16 %v2823_v61, %v2822_v59  ;;  %v1154_v63 = vpack.c.bf16 %v2839_v60, %v2838_v58 }
 0x1aa   : > { %v949_v0 = vpop.permute.xlu1 %948  ;;  %v946_v1 = vpop.permute.xlu0 %945 }
 0x1ab   : > { %vm989_vm9 = vcmp.eq.s32.totalorder %v949_v0, %v3785_v52  ;;  %vm988_vm10 = vcmp.eq.s32.totalorder %v946_v1, %v3785_v52  ;;  %3070 = vmatprep.mubr.msk.bf16.mxu0 %vm1167_vm8, %v1034_v62  ;;  %3090 = vmatprep.mubr.msk.bf16.mxu1 %vm1167_vm8, %v1154_v63 }
 0x1ac   : > { %v2825_v2 = vsel %vm989_vm9, 1.0, %v3496_v57  ;;  %v2824_v3 = vsel %vm988_vm10, 1.0, %v3496_v57 }
 0x1ad   : > { %v1035_v4 = vpack.c.bf16 %v2825_v2, %v2824_v3 }
 0x1ae   : > { %v1069_v5 = vpop.permute.xlu1 %1068  ;;  %v1066_v6 = vpop.permute.xlu0 %1065 }
 0x1af   : > { %vm1109_vm11 = vcmp.eq.s32.totalorder %v1069_v5, %v3785_v52  ;;  %vm1108_vm12 = vcmp.eq.s32.totalorder %v1066_v6, %v3785_v52  ;;  %3071 = vmatmul.mubr.msk.bf16.vlgmr.msra.gmra.mrb[0].mxu0 %vm1167_vm8, %v1035_v4 }
 0x1b0   : > { %v2841_v7 = vsel %vm1109_vm11, 1.0, %v3496_v57  ;;  %v2840_v8 = vsel %vm1108_vm12, 1.0, %v3496_v57 }
 0x1b1   : > { %v1155_v9 = vpack.c.bf16 %v2841_v7, %v2840_v8 }
 0x1b2   : > { %v955_v10 = vpop.permute.xlu1 %954  ;;  %v952_v11 = vpop.permute.xlu0 %951 }
 0x1b3   : > { %vm991_vm13 = vcmp.eq.s32.totalorder %v955_v10, %v3785_v52  ;;  %vm990_vm14 = vcmp.eq.s32.totalorder %v952_v11, %v3785_v52  ;;  %3091 = vmatmul.mubr.msk.bf16.vlgmr.msra.gmra.mrb[0].mxu1 %vm1167_vm8, %v1155_v9 }
 0x1b4   : > { %v2827_v12 = vsel %vm991_vm13, 1.0, %v3496_v57  ;;  %v2826_v13 = vsel %vm990_vm14, 1.0, %v3496_v57 }
 0x1b5   : > { %v1036_v14 = vpack.c.bf16 %v2827_v12, %v2826_v13 }
 0x1b6   : > { %v1075_v15 = vpop.permute.xlu1 %1074  ;;  %v1072_v16 = vpop.permute.xlu0 %1071 }
 0x1b7   : > { %vm1111_vm15 = vcmp.eq.s32.totalorder %v1075_v15, %v3785_v52  ;;  %vm1110_vm0 = vcmp.eq.s32.totalorder %v1072_v16, %v3785_v52  ;;  %3074 = vmatprep.mubr.msk.bf16.mxu0 %vm1167_vm8, %v1036_v14 }
 0x1b8   : > { %v2843_v17 = vsel %vm1111_vm15, 1.0, %v3496_v57  ;;  %v2842_v18 = vsel %vm1110_vm0, 1.0, %v3496_v57 }
 0x1b9   : > { %v1156_v19 = vpack.c.bf16 %v2843_v17, %v2842_v18 }
 0x1ba   : > { %v961_v20 = vpop.permute.xlu1 %960  ;;  %v958_v21 = vpop.permute.xlu0 %957 }
 0x1bb   : > { %vm993_vm1 = vcmp.eq.s32.totalorder %v961_v20, %v3785_v52  ;;  %vm992_vm2 = vcmp.eq.s32.totalorder %v958_v21, %v3785_v52  ;;  %3094 = vmatprep.mubr.msk.bf16.mxu1 %vm1167_vm8, %v1156_v19 }
 0x1bc   : > { %v2829_v22 = vsel %vm993_vm1, 1.0, %v3496_v57  ;;  %v2828_v23 = vsel %vm992_vm2, 1.0, %v3496_v57 }
 0x1bd   : > { %v1037_v24 = vpack.c.bf16 %v2829_v22, %v2828_v23 }
 0x1be   : > { %v1081_v25 = vpop.permute.xlu1 %1080  ;;  %v1078_v26 = vpop.permute.xlu0 %1077 }
 0x1bf   : > { %vm1113_vm4 = vcmp.eq.s32.totalorder %v1081_v25, %v3785_v52  ;;  %vm1112_vm5 = vcmp.eq.s32.totalorder %v1078_v26, %v3785_v52  ;;  %3075 = vmatmul.mubr.msk.bf16.gmra.mrb[4].mxu0 %vm1167_vm8, %v1037_v24 }
 0x1c0   : > { %v2845_v27 = vsel %vm1113_vm4, 1.0, %v3496_v57  ;;  %v2844_v28 = vsel %vm1112_vm5, 1.0, %v3496_v57 }
 0x1c1   : > { %v1157_v29 = vpack.c.bf16 %v2845_v27, %v2844_v28 }
 0x1c2   : > { %v967_v30 = vpop.permute.xlu1 %966  ;;  %v964_v31 = vpop.permute.xlu0 %963 }
 0x1c3   : > { %vm995_vm6 = vcmp.eq.s32.totalorder %v967_v30, %v3785_v52  ;;  %vm994_vm7 = vcmp.eq.s32.totalorder %v964_v31, %v3785_v52  ;;  %3095 = vmatmul.mubr.msk.bf16.gmra.mrb[4].mxu1 %vm1167_vm8, %v1157_v29 }
 0x1c4   : > { %v2831_v32 = vsel %vm995_vm6, 1.0, %v3496_v57  ;;  %v2830_v33 = vsel %vm994_vm7, 1.0, %v3496_v57 }
 0x1c5   : > { %v1038_v34 = vpack.c.bf16 %v2831_v32, %v2830_v33 }
 0x1c6   : > { %v1087_v35 = vpop.permute.xlu1 %1086  ;;  %v1084_v36 = vpop.permute.xlu0 %1083 }
 0x1c7   : > { %vm1115_vm9 = vcmp.eq.s32.totalorder %v1087_v35, %v3785_v52  ;;  %vm1114_vm10 = vcmp.eq.s32.totalorder %v1084_v36, %v3785_v52  ;;  %3078 = vmatprep.mubr.msk.bf16.mxu0 %vm1167_vm8, %v1038_v34 }
 0x1c8   : > { %v2847_v37 = vsel %vm1115_vm9, 1.0, %v3496_v57  ;;  %v2846_v38 = vsel %vm1114_vm10, 1.0, %v3496_v57 }
 0x1c9   : > { %v1158_v39 = vpack.c.bf16 %v2847_v37, %v2846_v38 }
 0x1ca   : > { %v973_v40 = vpop.permute.xlu1 %972  ;;  %v970_v41 = vpop.permute.xlu0 %969 }
 0x1cb   : > { %vm997_vm11 = vcmp.eq.s32.totalorder %v973_v40, %v3785_v52  ;;  %vm996_vm12 = vcmp.eq.s32.totalorder %v970_v41, %v3785_v52  ;;  %3098 = vmatprep.mubr.msk.bf16.mxu1 %vm1167_vm8, %v1158_v39  ;;  %v1434_v39 = vld [vmem:[%s4204_s7] sm:$0xf] (!%p2870_p5) }
 0x1cc   : > { %v2833_v42 = vsel %vm997_vm11, 1.0, %v3496_v57  ;;  %v2832_v43 = vsel %vm996_vm12, 1.0, %v3496_v57  ;;  %3299 = vmatprep.subr.msk.bf16.mxu0 (!%p2870_p5), %vm1192_vm3, %v1434_v39  ;;  %v1508_v40 = vsel (!%p2870_p5), %vm1192_vm3, %v1434_v39, 0  ;;  %v3381_v41 = vld [vmem:[%s3702_s8] sm:$0xff] (!%p2870_p5)   ;;  %vm1659_vm3 = vcmask (!%p2870_p5), 261120  }
 0x1cd   : > { %v1039_v44 = vpack.c.bf16 %v2833_v42, %v2832_v43  ;;  %v3382_v42 = vld [vmem:[%s3702_s8 + $0x8] sm:$0xff] (!%p2870_p5)   ;;  %3107 = vmatpush3.bf16.msra.mxu0 (!%p2870_p5), %v1508_v40  ;;  %v3383_v43 = vld [vmem:[%s3702_s8 + $0x10] sm:$0xff] (!%p2870_p5)  }
 0x1ce   : > { %v1093_v45 = vpop.permute.xlu1 %1092  ;;  %v1090_v46 = vpop.permute.xlu0 %1089 }
 0x1cf   : > { %vm1117_vm13 = vcmp.eq.s32.totalorder %v1093_v45, %v3785_v52  ;;  %vm1116_vm14 = vcmp.eq.s32.totalorder %v1090_v46, %v3785_v52  ;;  %3079 = vmatmul.mubr.msk.bf16.gmra.mrb[8].mxu0 %vm1167_vm8, %v1039_v44  ;;  %v3384_v44 = vld [vmem:[%s3702_s8 + $0x18] sm:$0xff] (!%p2870_p5)   ;;  %v3385_v45 = vld [vmem:[%s3702_s8 + $0x20] sm:$0xff] (!%p2870_p5)   ;;  %v3386_v46 = vld [vmem:[%s3702_s8 + $0x28] sm:$0xff] (!%p2870_p5)  }
 0x1d0   : > { %v2849_v47 = vsel %vm1117_vm13, 1.0, %v3496_v57  ;;  %v2848_v48 = vsel %vm1116_vm14, 1.0, %v3496_v57 }
 0x1d1   : > { %v1159_v49 = vpack.c.bf16 %v2849_v47, %v2848_v48  ;;  %v3387_v47 = vld [vmem:[%s3702_s8 + $0x30] sm:$0xff] (!%p2870_p5)   ;;  %v3388_v48 = vld [vmem:[%s3702_s8 + $0x38] sm:$0xff] (!%p2870_p5)  }
 0x1d2   : > { %v979_v50 = vpop.permute.xlu1 %978  ;;  %v976_v53 = vpop.permute.xlu0 %975 }
 0x1d3   : > { %vm999_vm15 = vcmp.eq.s32.totalorder %v979_v50, %v3785_v52  ;;  %vm998_vm0 = vcmp.eq.s32.totalorder %v976_v53, %v3785_v52  ;;  %3099 = vmatmul.mubr.msk.bf16.gmra.mrb[8].mxu1 %vm1167_vm8, %v1159_v49  ;;  %v3389_v49 = vld [vmem:[%s3722_s27] sm:$0xff] (!%p2870_p5)   ;;  %v3390_v50 = vld [vmem:[%s3722_s27 + $0x8] sm:$0xff] (!%p2870_p5)  }
 0x1d4   : > { %v2835_v54 = vsel %vm999_vm15, 1.0, %v3496_v57  ;;  %v2834_v55 = vsel %vm998_vm0, 1.0, %v3496_v57  ;;  %3124 = vmatprep.subr.bf16.mxu1 (!%p2870_p5), %v3389_v49  ;;  %v3391_v53 = vld [vmem:[%s3717_s14] sm:$0xff] (!%p2870_p5)  }
 0x1d5   : > { %v1040_v56 = vpack.c.bf16 %v2835_v54, %v2834_v55  ;;  %3125 = vmatpush3.bf16.msra.mxu1 (!%p2870_p5), %v3389_v49  ;;  %v3393_v54 = vld [vmem:[%s3727_s18] sm:$0xff] (!%p2870_p5)   ;;  %v3394_v55 = vld [vmem:[%s3727_s18 + $0x8] sm:$0xff] (!%p2870_p5)   ;;  %s4265_s18 = scalar_lea.vmem (!%p2870_p5), %s4208_s11, %s4296_s28 }
 0x1d6   : > { %v1099_v58 = vpop.permute.xlu1 %1098  ;;  %v1096_v59 = vpop.permute.xlu0 %1095  ;;  %3126 = vmatprep.subr.bf16.mxu1 (!%p2870_p5), %v3390_v50  ;;  %3164 = vmatprep.subr.bf16.mxu0 (!%p2870_p5), %v3393_v54 }
 0x1d7   : > { %vm1119_vm1 = vcmp.eq.s32.totalorder %v1099_v58, %v3785_v52  ;;  %vm1118_vm2 = vcmp.eq.s32.totalorder %v1096_v59, %v3785_v52  ;;  %3082 = vmatprep.mubr.msk.bf16.mxu0 %vm1167_vm8, %v1040_v56  ;;  %v2871_v58 = vld [vmem:[%s4264_s23] ss:$0 sm:$0xff] (!%p2870_p5) }
 0x1d8   : > { %v2851_v60 = vsel %vm1119_vm1, 1.0, %v3496_v57  ;;  %v2850_v61 = vsel %vm1118_vm2, 1.0, %v3496_v57 }
 0x1d9   : > { %v1160_v62 = vpack.c.bf16 %v2851_v60, %v2850_v61  ;;  %3127 = vmatpush3.bf16.msra.mxu1 (!%p2870_p5), %v3390_v50 }
 0x1da   : > { %v985_v63 = vpop.permute.xlu1 %984  ;;  %v982_v0 = vpop.permute.xlu0 %981  ;;  %3144 = vmatprep.subr.bf16.mxu1 (!%p2870_p5), %v3391_v53 }
 0x1db   : > { %vm1001_vm4 = vcmp.eq.s32.totalorder %v985_v63, %v3785_v52  ;;  %vm1000_vm5 = vcmp.eq.s32.totalorder %v982_v0, %v3785_v52  ;;  %3102 = vmatprep.mubr.msk.bf16.mxu1 %vm1167_vm8, %v1160_v62 }
 0x1dc   : > { %v2837_v1 = vsel %vm1001_vm4, 1.0, %v3496_v57  ;;  %v2836_v2 = vsel %vm1000_vm5, 1.0, %v3496_v57 }
 0x1dd   : > { %v1041_v3 = vpack.c.bf16 %v2837_v1, %v2836_v2 }
 0x1de   : > { %v1105_v4 = vpop.permute.xlu1 %1104  ;;  %v1102_v5 = vpop.permute.xlu0 %1101 }
 0x1df   : > { %vm1121_vm6 = vcmp.eq.s32.totalorder %v1105_v4, %v3785_v52  ;;  %vm1120_vm7 = vcmp.eq.s32.totalorder %v1102_v5, %v3785_v52  ;;  %3083 = vmatmul.mubr.msk.bf16.gmra.mrb[12].mxu0 %vm1167_vm8, %v1041_v3  ;;  %v3392_v4 = vld [vmem:[%s3717_s14 + $0x8] sm:$0xff] (!%p2870_p5)  }
 0x1e0   : > { %v2853_v6 = vsel %vm1121_vm6, 1.0, %v3496_v57  ;;  %v2852_v7 = vsel %vm1120_vm7, 1.0, %v3496_v57 }
 0x1e1   : > { %v1161_v8 = vpack.c.bf16 %v2853_v6, %v2852_v7 }
 0x1e3   : > { %3103 = vmatmul.mubr.msk.bf16.gmra.mrb[12].mxu1 %vm1167_vm8, %v1161_v8  ;;  %vm1482_vm8 = vcmask (!%p2870_p5), 64512  }
 0x1e4   : > { %3108 = vmatprep.mubr.msk.bf16.mxu0 (!%p2870_p5), %vm1482_vm8, %v3381_v41 }
 0x282   : > { %v3867_v9 = vpop.f32.mrb[0].mxu0 }
 0x283   : > { %v3869_v10 = vpop.f32.mrb[1].mxu0 }
 0x284   : > { %v3871_v11 = vpop.f32.mrb[2].mxu0 }
 0x285   : > { %v3873_v12 = vpop.f32.mrb[3].mxu0  ;;  %3109 = vmatmul.mubr.msk.bf16.vlgmr.msra.gmra.mrb[0].mxu0 (!%p2870_p5), %vm1482_vm8, %v3382_v42 }
 0x286   : > { %v3875_v13 = vpop.f32.mrb[0].mxu1  ;;  %3112 = vmatprep.mubr.msk.bf16.mxu0 (!%p2870_p5), %vm1482_vm8, %v3383_v43  ;;  %3165 = vmatpush3.bf16.msra.mxu0 (!%p2870_p5), %v3393_v54 }
 0x287   : > { %v3877_v52 = vpop.f32.mrb[1].mxu1  ;;  %3166 = vmatprep.subr.bf16.mxu0 (!%p2870_p5), %v3394_v55 }
 0x288   : > { %v3879_v14 = vpop.f32.mrb[2].mxu1 }
 0x289   : > { %v3881_v15 = vpop.f32.mrb[3].mxu1 }
 0x28a   : > { %3167 = vmatpush3.bf16.msra.mxu0 (!%p2870_p5), %v3394_v55 }
 0x292   : > { %v3883_v57 = vpop.f32.mrb[4].mxu0 }
 0x293   : > { %v3885_v16 = vpop.f32.mrb[5].mxu0 }
 0x294   : > { %v3887_v17 = vpop.f32.mrb[6].mxu0 }
 0x295   : > { %v3889_v18 = vpop.f32.mrb[7].mxu0  ;;  %3113 = vmatmul.mubr.msk.bf16.gmra.mrb[4].mxu0 (!%p2870_p5), %vm1482_vm8, %v3384_v44 }
 0x296   : > { %v3891_v19 = vpop.f32.mrb[4].mxu1  ;;  %3116 = vmatprep.mubr.msk.bf16.mxu0 (!%p2870_p5), %vm1482_vm8, %v3385_v45 }
 0x297   : > { %v3893_v20 = vpop.f32.mrb[5].mxu1 }
 0x298   : > { %v3895_v21 = vpop.f32.mrb[6].mxu1 }
 0x299   : > { %v3897_v22 = vpop.f32.mrb[7].mxu1 }
 0x2a2   : > { %v3899_v23 = vpop.f32.mrb[8].mxu0 }
 0x2a3   : > { %v3901_v24 = vpop.f32.mrb[9].mxu0 }
 0x2a4   : > { %v3903_v25 = vpop.f32.mrb[10].mxu0 }
 0x2a5   : > { %v3905_v26 = vpop.f32.mrb[11].mxu0  ;;  %3117 = vmatmul.mubr.msk.bf16.gmra.mrb[8].mxu0 (!%p2870_p5), %vm1482_vm8, %v3386_v46 }
 0x2a6   : > { %v3907_v27 = vpop.f32.mrb[8].mxu1  ;;  %3120 = vmatprep.mubr.msk.bf16.mxu0 (!%p2870_p5), %vm1482_vm8, %v3387_v47 }
 0x2a7   : > { %v3909_v28 = vpop.f32.mrb[9].mxu1 }
 0x2a8   : > { %v3911_v29 = vpop.f32.mrb[10].mxu1 }
 0x2a9   : > { %v3913_v30 = vpop.f32.mrb[11].mxu1 }
 0x2b2   : > { %v3915_v31 = vpop.f32.mrb[12].mxu0 }
 0x2b3   : > { %v3917_v32 = vpop.f32.mrb[13].mxu0  ;;  %1417 = sbr.rel (%p2870_p5) target bundleno = 1622 (0x656), region = 104 }
 0x2b4   : > { %v3919_v33 = vpop.f32.mrb[14].mxu0 }
 0x2b5   : > { %v3921_v34 = vpop.f32.mrb[15].mxu0  ;;  %3121 = vmatmul.mubr.msk.bf16.gmra.mrb[12].mxu0 (!%p2870_p5), %vm1482_vm8, %v3388_v48 }
 0x2b6   : > { %v3923_v35 = vpop.f32.mrb[12].mxu1 }
 0x2b7   : > { %v3925_v36 = vpop.f32.mrb[13].mxu1 }
 0x2b8   : > { %v3927_v37 = vpop.f32.mrb[14].mxu1 }
 0x2b9   : > { %v3929_v38 = vpop.f32.mrb[15].mxu1 }
 0x358   : > { %v3110_v56 = vpop.f32.mrb[0].mxu0 }
 0x359   : > { %v1544_v59 = vpop.f32.mrb[1].mxu0  ;;  %v1553_v61 = vadd.f32 %v3110_v56, %v2871_v58 }
 0x35a   : > { %v3111_v60 = vpop.f32.mrb[2].mxu0  ;;  %v1545_v0 = vadd.f32 %v2871_v58, %v1544_v59 }
 0x35b   : > { %v1556_v62 = vadd.f32 %v3111_v60, %v2871_v58  ;;  %v1547_v63 = vpop.f32.mrb[3].mxu0 }
 0x35c   : > { %v1548_v1 = vadd.f32 %v2871_v58, %v1547_v63  ;;  %v1608_v63 = vadd.f32 %v3881_v15, %v3873_v12 }
 0x35d   : > { %v1636_v2 = vpack.c.bf16 %v1556_v62, %v1553_v61  ;;  %v1607_v62 = vadd.f32 %v3877_v52, %v3869_v10 }
 0x35e   : > { %v1635_v3 = vpack.c.bf16 %v1548_v1, %v1545_v0 }
 0x360   : > { %3128 = vmatprep.mubr.msk.bf16.mxu1 %vm1659_vm3, %v1635_v3 }
 0x361   : > { %3129 = vmatmul.mubr.msk.bf16.vlgmr.msra.gmra.mrb[0].mxu1 %vm1659_vm3, %v1636_v2 }
 0x362   : > { %3145 = vmatpush3.bf16.msra.mxu1 %v3391_v53 }
 0x363   : > { %3146 = vmatprep.subr.bf16.mxu1 %v3392_v4 }
 0x366   : > { %3147 = vmatpush3.bf16.msra.mxu1 %v3392_v4 }
 0x368   : > { %v3114_v5 = vpop.f32.mrb[4].mxu0 }
 0x369   : > { %v1560_v6 = vpop.f32.mrb[5].mxu0  ;;  %v1569_v8 = vadd.f32 %v3114_v5, %v2871_v58 }
 0x36a   : > { %v3115_v7 = vpop.f32.mrb[6].mxu0  ;;  %v1561_v41 = vadd.f32 %v2871_v58, %v1560_v6 }
 0x36b   : > { %v1572_v39 = vadd.f32 %v3115_v7, %v2871_v58  ;;  %v1563_v40 = vpop.f32.mrb[7].mxu0  ;;  %v1623_v7 = vpack.c.bf16 %v1608_v63, %v1607_v62  ;;  %v2908_v62 = vld [vmem:[%s4265_s18] ss:$0 sm:$0xff] }
 0x36c   : > { %v1564_v42 = vadd.f32 %v2871_v58, %v1563_v40  ;;  %v1611_v40 = vadd.f32 %v3893_v20, %v3885_v16 }
 0x36d   : > { %v1638_v43 = vpack.c.bf16 %v1572_v39, %v1569_v8  ;;  %v1609_v8 = vadd.f32 %v3875_v13, %v3867_v9  ;;  %v1610_v39 = vadd.f32 %v3879_v14, %v3871_v11 }
 0x36e   : > { %v1637_v44 = vpack.c.bf16 %v1564_v42, %v1561_v41 }
 0x36f   : > { %v1624_v41 = vpack.c.bf16 %v1610_v39, %v1609_v8 }
 0x370   : > { %3132 = vmatprep.mubr.msk.bf16.mxu1 %vm1659_vm3, %v1637_v44  ;;  %v1614_v44 = vadd.f32 %v3895_v21, %v3887_v17 }
 0x371   : > { %3133 = vmatmul.mubr.msk.bf16.gmra.mrb[4].mxu1 %vm1659_vm3, %v1638_v43  ;;  %v1613_v43 = vadd.f32 %v3891_v19, %v3883_v57 }
 0x378   : > { %v3118_v45 = vpop.f32.mrb[8].mxu0 }
 0x379   : > { %v1576_v46 = vpop.f32.mrb[9].mxu0  ;;  %v1585_v48 = vadd.f32 %v3118_v45, %v2871_v58  ;;  %v1615_v45 = vadd.f32 %v3909_v28, %v3901_v24 }
 0x37a   : > { %v3119_v47 = vpop.f32.mrb[10].mxu0  ;;  %v1577_v53 = vadd.f32 %v2871_v58, %v1576_v46  ;;  %v1616_v46 = vadd.f32 %v3913_v30, %v3905_v26 }
 0x37b   : > { %v1588_v49 = vadd.f32 %v3119_v47, %v2871_v58  ;;  %v1579_v50 = vpop.f32.mrb[11].mxu0  ;;  %v1626_v47 = vpack.c.bf16 %v1614_v44, %v1613_v43 }
 0x37c   : > { %v1580_v54 = vadd.f32 %v2871_v58, %v1579_v50  ;;  %v1618_v50 = vadd.f32 %v3911_v29, %v3903_v25 }
 0x37d   : > { %v1640_v55 = vpack.c.bf16 %v1588_v49, %v1585_v48  ;;  %v1627_v48 = vpack.c.bf16 %v1616_v46, %v1615_v45  ;;  %v1617_v49 = vadd.f32 %v3907_v27, %v3899_v23 }
 0x37e   : > { %v1639_v56 = vpack.c.bf16 %v1580_v54, %v1577_v53  ;;  %v1619_v53 = vadd.f32 %v3925_v36, %v3917_v32  ;;  %v1620_v54 = vadd.f32 %v3929_v38, %v3921_v34 }
 0x380   : > { %3136 = vmatprep.mubr.msk.bf16.mxu1 %vm1659_vm3, %v1639_v56  ;;  %v1629_v56 = vpack.c.bf16 %v1620_v54, %v1619_v53 }
 0x381   : > { %3137 = vmatmul.mubr.msk.bf16.gmra.mrb[8].mxu1 %vm1659_vm3, %v1640_v55  ;;  %v1628_v55 = vpack.c.bf16 %v1618_v50, %v1617_v49 }
 0x388   : > { %v3122_v59 = vpop.f32.mrb[12].mxu0 }
 0x389   : > { %v1592_v60 = vpop.f32.mrb[13].mxu0  ;;  %v1601_v0 = vadd.f32 %v3122_v59, %v2871_v58  ;;  %v1621_v59 = vadd.f32 %v3923_v35, %v3915_v31 }
 0x38a   : > { %v3123_v61 = vpop.f32.mrb[14].mxu0  ;;  %v1593_v3 = vadd.f32 %v2871_v58, %v1592_v60  ;;  %v1622_v60 = vadd.f32 %v3927_v37, %v3919_v33 }
 0x38b   : > { %v1604_v1 = vadd.f32 %v3123_v61, %v2871_v58  ;;  %v1595_v2 = vpop.f32.mrb[15].mxu0 }
 0x38c   : > { %v1596_v4 = vadd.f32 %v2871_v58, %v1595_v2  ;;  %v1612_v58 = vadd.f32 %v3897_v22, %v3889_v18  ;;  %v1630_v61 = vpack.c.bf16 %v1622_v60, %v1621_v59 }
 0x38d   : > { %v1642_v5 = vpack.c.bf16 %v1604_v1, %v1601_v0 }
 0x38e   : > { %v1641_v6 = vpack.c.bf16 %v1596_v4, %v1593_v3  ;;  %v1625_v42 = vpack.c.bf16 %v1612_v58, %v1611_v40 }
 0x390   : > { %3140 = vmatprep.mubr.msk.bf16.mxu1 %vm1659_vm3, %v1641_v6 }
 0x391   : > { %3141 = vmatmul.mubr.msk.bf16.gmra.mrb[12].mxu1 %vm1659_vm3, %v1642_v5 }
 0x392   : > { %3148 = vmatprep.mubr.msk.bf16.mxu1 %vm1659_vm3, %v1623_v7 }
 0x399   : > { %3149 = vmatmul.mubr.msk.bf16.vlgmr.msra.gmra.mrb[0].mxu1 %vm1659_vm3, %v1624_v41 }
 0x39a   : > { %3152 = vmatprep.mubr.msk.bf16.mxu1 %vm1659_vm3, %v1625_v42 }
 0x3a1   : > { %3153 = vmatmul.mubr.msk.bf16.gmra.mrb[4].mxu1 %vm1659_vm3, %v1626_v47 }
 0x3a2   : > { %3156 = vmatprep.mubr.msk.bf16.mxu1 %vm1659_vm3, %v1627_v48 }
 0x3a9   : > { %3157 = vmatmul.mubr.msk.bf16.gmra.mrb[8].mxu1 %vm1659_vm3, %v1628_v55 }
 0x3aa   : > { %3160 = vmatprep.mubr.msk.bf16.mxu1 %vm1659_vm3, %v1629_v56 }
 0x3b1   : > { %3161 = vmatmul.mubr.msk.bf16.gmra.mrb[12].mxu1 %vm1659_vm3, %v1630_v61 }
 0x46c   : > { %v3150_v63 = vpop.f32.mrb[0].mxu1 }
 0x46d   : > { %v1923_v0 = vadd.f32 %v3150_v63, %v2908_v62  ;;  %v1851_v1 = vpop.f32.mrb[1].mxu1 }
 0x46e   : > { %v1921_v2 = vadd.f32 %v2908_v62, %v1851_v1  ;;  %v3151_v3 = vpop.f32.mrb[2].mxu1 }
 0x46f   : > { %v1924_v4 = vadd.f32 %v3151_v3, %v2908_v62  ;;  %v1854_v5 = vpop.f32.mrb[3].mxu1  ;;  %v1939_v7 = vmax.f32 %v1923_v0, 0.0 }
 0x470   : > { %v1922_v6 = vadd.f32 %v2908_v62, %v1854_v5  ;;  %v1937_v39 = vmax.f32 %v1921_v2, 0.0 }
 0x471   : > { %v1940_v8 = vmax.f32 %v1924_v4, 0.0 }
 0x472   : > { %v1938_v40 = vmax.f32 %v1922_v6, 0.0 }
 0x473   : > { %v1954_v58 = vpack.c.bf16 %v1940_v8, %v1939_v7 }
 0x474   : > { %v1953_v41 = vpack.c.bf16 %v1938_v40, %v1937_v39  ;;  %v3154_v42 = vpop.f32.mrb[4].mxu1 }
 0x475   : > { %v1927_v43 = vadd.f32 %v3154_v42, %v2908_v62  ;;  %v1867_v44 = vpop.f32.mrb[5].mxu1 }
 0x476   : > { %v1925_v45 = vadd.f32 %v2908_v62, %v1867_v44  ;;  %v3155_v46 = vpop.f32.mrb[6].mxu1  ;;  %3168 = vmatprep.mubr.msk.bf16.mxu0 %vm1659_vm3, %v1953_v41 }
 0x477   : > { %v1928_v47 = vadd.f32 %v3155_v46, %v2908_v62  ;;  %v1870_v48 = vpop.f32.mrb[7].mxu1  ;;  %3169 = vmatmul.mubr.msk.bf16.vlgmr.msra.gmra.mrb[16].mxu0 %vm1659_vm3, %v1954_v58  ;;  %v1943_v50 = vmax.f32 %v1927_v43, 0.0 }
 0x478   : > { %v1926_v49 = vadd.f32 %v2908_v62, %v1870_v48  ;;  %v1941_v54 = vmax.f32 %v1925_v45, 0.0 }
 0x479   : > { %v1944_v53 = vmax.f32 %v1928_v47, 0.0 }
 0x47a   : > { %v1942_v55 = vmax.f32 %v1926_v49, 0.0 }
 0x47b   : > { %v1956_v56 = vpack.c.bf16 %v1944_v53, %v1943_v50 }
 0x47c   : > { %v1955_v59 = vpack.c.bf16 %v1942_v55, %v1941_v54  ;;  %v3158_v60 = vpop.f32.mrb[8].mxu1 }
 0x47d   : > { %v1931_v61 = vadd.f32 %v3158_v60, %v2908_v62  ;;  %v1883_v63 = vpop.f32.mrb[9].mxu1  ;;  %v4029_v60 = vld [vmem:[%s4267_s26] ss:$0 sm:$0xff] }
 0x47e   : > { %v1929_v0 = vadd.f32 %v2908_v62, %v1883_v63  ;;  %v3159_v1 = vpop.f32.mrb[10].mxu1  ;;  %3172 = vmatprep.mubr.msk.bf16.mxu0 %vm1659_vm3, %v1955_v59  ;;  %v2909_v63 = vld [vmem:[%s828_s20] ss:$0 sm:$0xff] }
 0x47f   : > { %v1932_v2 = vadd.f32 %v3159_v1, %v2908_v62  ;;  %v1886_v3 = vpop.f32.mrb[11].mxu1  ;;  %3173 = vmatmul.mubr.msk.bf16.gmra.mrb[20].mxu0 %vm1659_vm3, %v1956_v56  ;;  %v1947_v5 = vmax.f32 %v1931_v61, 0.0  ;;  %v2106_v56 = vshrl.u32 %v920_v51, 7  ;;  %v3497_v61 = vmov 1.0|1.0  }
 0x480   : > { %v1930_v4 = vadd.f32 %v2908_v62, %v1886_v3  ;;  %v1945_v7 = vmax.f32 %v1929_v0, 0.0 }
 0x481   : > { %v1948_v6 = vmax.f32 %v1932_v2, 0.0  ;;  %v2107_v59 = vadd.s32 8, %v2106_v56  ;;  %vm2114_vm9 = vcmp.eq.s32.totalorder %v4029_v60, %v2106_v56 }
 0x482   : > { %v1946_v8 = vmax.f32 %v1930_v4, 0.0 }
 0x483   : > { %v1958_v39 = vpack.c.bf16 %v1948_v6, %v1947_v5  ;;  %vm2115_vm10 = vcmp.eq.s32.totalorder %v4029_v60, %v2107_v59 }
 0x484   : > { %v1957_v40 = vpack.c.bf16 %v1946_v8, %v1945_v7  ;;  %v3162_v58 = vpop.f32.mrb[12].mxu1  ;;  %vm2924_vm11 = vmpackc.low %vm2115_vm10, %vm2114_vm9 }
 0x485   : > { %v1935_v41 = vadd.f32 %v3162_v58, %v2908_v62  ;;  %v1899_v42 = vpop.f32.mrb[13].mxu1 }
 0x486   : > { %v1933_v43 = vadd.f32 %v2908_v62, %v1899_v42  ;;  %v3163_v44 = vpop.f32.mrb[14].mxu1  ;;  %3176 = vmatprep.mubr.msk.bf16.mxu0 %vm1659_vm3, %v1957_v40 }
 0x487   : > { %v1936_v45 = vadd.f32 %v3163_v44, %v2908_v62  ;;  %v1902_v46 = vpop.f32.mrb[15].mxu1  ;;  %3177 = vmatmul.mubr.msk.bf16.gmra.mrb[24].mxu0 %vm1659_vm3, %v1958_v39  ;;  %v1951_v48 = vmax.f32 %v1935_v41, 0.0 }
 0x488   : > { %v1934_v47 = vadd.f32 %v2908_v62, %v1902_v46  ;;  %v1949_v50 = vmax.f32 %v1933_v43, 0.0  ;;  %v4031_v62 = vadd.s32 16, %v2106_v56 }
 0x489   : > { %v1952_v49 = vmax.f32 %v1936_v45, 0.0 }
 0x48a   : > { %v1950_v53 = vmax.f32 %v1934_v47, 0.0  ;;  %vm2116_vm12 = vcmp.eq.s32.totalorder %v4029_v60, %v4031_v62 }
 0x48b   : > { %v1960_v54 = vpack.c.bf16 %v1952_v49, %v1951_v48  ;;  %vm2926_vm13 = vmpackc.low %vm2116_vm12, %vm2116_vm12 }
 0x48c   : > { %v1959_v55 = vpack.c.bf16 %v1950_v53, %v1949_v50 }
 0x48e   : > { %3180 = vmatprep.mubr.msk.bf16.mxu0 %vm1659_vm3, %v1959_v55 }
 0x48f   : > { %3181 = vmatmul.mubr.msk.bf16.gmra.mrb[28].mxu0 %vm1659_vm3, %v1960_v54 }
 0x490   : > { %3200 = vmatprep.mubr.msk.bf16.mxu0 %vm2924_vm11, %v3497_v61 }
 0x54a   : > { %v3170_v51 = vpop.f32.mrb[16].mxu0 }
 0x54b   : > { %v2042_v0 = vpop.f32.mrb[17].mxu0  ;;  %v2051_v2 = vadd.f32 %v3170_v51, %v2909_v63 }
 0x54c   : > { %v3171_v1 = vpop.f32.mrb[18].mxu0  ;;  %v2043_v5 = vadd.f32 %v2909_v63, %v2042_v0 }
 0x54d   : > { %v2054_v3 = vadd.f32 %v3171_v1, %v2909_v63  ;;  %v2045_v4 = vpop.f32.mrb[19].mxu0 }
 0x54e   : > { %v2046_v6 = vadd.f32 %v2909_v63, %v2045_v4 }
 0x54f   : > { %v2126_v7 = vpack.c.bf16 %v2054_v3, %v2051_v2 }
 0x550   : > { %v2125_v8 = vpack.c.bf16 %v2046_v6, %v2043_v5 }
 0x552   : > { %v3174_v39 = vpop.f32.mrb[20].mxu0  ;;  %3184 = vmatprep.subr.bf16.mxu0 %v2125_v8 }
 0x553   : > { %v2058_v40 = vpop.f32.mrb[21].mxu0  ;;  %3185 = vmatpush3.bf16.msra.mxu0 %v2125_v8  ;;  %v2067_v41 = vadd.f32 %v3174_v39, %v2909_v63 }
 0x554   : > { %v3175_v58 = vpop.f32.mrb[22].mxu0  ;;  %3186 = vmatprep.subr.bf16.mxu0 %v2126_v7  ;;  %v2059_v44 = vadd.f32 %v2909_v63, %v2058_v40 }
 0x555   : > { %v2070_v42 = vadd.f32 %v3175_v58, %v2909_v63  ;;  %v2061_v43 = vpop.f32.mrb[23].mxu0 }
 0x556   : > { %v2062_v45 = vadd.f32 %v2909_v63, %v2061_v43 }
 0x557   : > { %v2128_v46 = vpack.c.bf16 %v2070_v42, %v2067_v41  ;;  %3187 = vmatpush3.bf16.msra.mxu0 %v2126_v7 }
 0x558   : > { %v2127_v47 = vpack.c.bf16 %v2062_v45, %v2059_v44 }
 0x55a   : > { %v3178_v48 = vpop.f32.mrb[24].mxu0  ;;  %3188 = vmatprep.subr.bf16.mxu0 %v2127_v47 }
 0x55b   : > { %v2074_v49 = vpop.f32.mrb[25].mxu0  ;;  %3189 = vmatpush3.bf16.msra.mxu0 %v2127_v47  ;;  %v2083_v53 = vadd.f32 %v3178_v48, %v2909_v63 }
 0x55c   : > { %v3179_v50 = vpop.f32.mrb[26].mxu0  ;;  %3190 = vmatprep.subr.bf16.mxu0 %v2128_v46  ;;  %v2075_v56 = vadd.f32 %v2909_v63, %v2074_v49 }
 0x55d   : > { %v2086_v54 = vadd.f32 %v3179_v50, %v2909_v63  ;;  %v2077_v55 = vpop.f32.mrb[27].mxu0 }
 0x55e   : > { %v2078_v59 = vadd.f32 %v2909_v63, %v2077_v55 }
 0x55f   : > { %v2130_v51 = vpack.c.bf16 %v2086_v54, %v2083_v53  ;;  %3191 = vmatpush3.bf16.msra.mxu0 %v2128_v46 }
 0x560   : > { %v2129_v0 = vpack.c.bf16 %v2078_v59, %v2075_v56 }
 0x562   : > { %v3182_v1 = vpop.f32.mrb[28].mxu0  ;;  %3192 = vmatprep.subr.bf16.mxu0 %v2129_v0 }
 0x563   : > { %v2090_v2 = vpop.f32.mrb[29].mxu0  ;;  %3193 = vmatpush3.bf16.msra.mxu0 %v2129_v0  ;;  %v2099_v4 = vadd.f32 %v3182_v1, %v2909_v63 }
 0x564   : > { %v3183_v3 = vpop.f32.mrb[30].mxu0  ;;  %3194 = vmatprep.subr.bf16.mxu0 %v2130_v51  ;;  %v2091_v7 = vadd.f32 %v2909_v63, %v2090_v2 }
 0x565   : > { %v2102_v5 = vadd.f32 %v3183_v3, %v2909_v63  ;;  %v2093_v6 = vpop.f32.mrb[31].mxu0 }
 0x566   : > { %v2094_v8 = vadd.f32 %v2909_v63, %v2093_v6  ;;  %v3498_v63 = vmov (!%p2928_p6), 0.0  }
 0x567   : > { %v2132_v39 = vpack.c.bf16 %v2102_v5, %v2099_v4  ;;  %3195 = vmatpush3.bf16.msra.mxu0 %v2130_v51  ;;  %2184 = vst.msk [vmem:[#allocation3] sm:$0xff] (!%p2928_p6), %vm1659_vm3, %v3498_v63  ;;  %2185 = vst.msk [vmem:[#allocation3 + $0x8] sm:$0xff] (!%p2928_p6), %vm1659_vm3, %v3498_v63 }
 0x568   : > { %v2131_v40 = vpack.c.bf16 %v2094_v8, %v2091_v7  ;;  %2186 = vst.msk [vmem:[#allocation3 + $0x10] sm:$0xff] (!%p2928_p6), %vm1659_vm3, %v3498_v63 }
 0x56a   : > { %3196 = vmatprep.subr.bf16.mxu0 %v2131_v40 }
 0x56b   : > { %3197 = vmatpush3.bf16.msra.mxu0 %v2131_v40 }
 0x56c   : > { %3198 = vmatprep.subr.bf16.mxu0 %v2132_v39 }
 0x56f   : > { %3199 = vmatpush3.bf16.msra.mxu0 %v2132_v39 }
 0x572   : > { %3201 = vmatmul.mubr.msk.bf16.vlgmr.msra.gmra.mrb[32].mxu0 %vm2926_vm13, %v3497_v61 }
 0x642   : > { %2183 = sbr.rel (%p2928_p6) target bundleno = 1609 (0x649), region = 108 }
 0x645   : > { %v3202_v58 = vpop.f32.mrb[32].mxu0 }
 0x646   : > { %v2167_v41 = vpop.f32.mrb[33].mxu0 }
 0x647   : > { %v3203_v42 = vpop.f32.mrb[34].mxu0 }
 0x648   : > { %v2170_v43 = vpop.f32.mrb[35].mxu0 }
 0x649 PF: > { %v2187_v44 = vld [vmem:[#allocation3] sm:$0xff]  ;;  %v2188_v60 = vld [vmem:[#allocation3 + $0x8] sm:$0xff]  ;;  %v2189_v62 = vld [vmem:[#allocation3 + $0x10] sm:$0xff]  ;;  %p2929_p7 = scmp.ne.s32.totalorder %s3477_s22, 2 }
 0x64a   : > { %v2190_v45 = vadd.f32 %v2187_v44, %v2167_v41  ;;  %v2191_v61 = vadd.f32 %v2188_v60, %v2170_v43  ;;  %v2192_v46 = vadd.f32 %v3202_v58, %v2189_v62 }
 0x64b   : > { %2199 = sbr.rel (%p2929_p7) target bundleno = 1622 (0x656), region = 112 }
 0x64c   : > { %2193 = vst.msk [vmem:[#allocation3] sm:$0xff] %vm1659_vm3, %v2190_v45  ;;  %2194 = vst.msk [vmem:[#allocation3 + $0x8] sm:$0xff] %vm1659_vm3, %v2191_v61 }
 0x64d   : > { %2195 = vst.msk [vmem:[#allocation3 + $0x10] sm:$0xff] %vm1659_vm3, %v2192_v46 }
 0x653   : > { %v2200_v47 = vld [vmem:[#allocation3] sm:$0xff]  ;;  %v2201_v48 = vld [vmem:[#allocation3 + $0x8] sm:$0xff] }
 0x654   : > { %v2202_v49 = vld [vmem:[#allocation3 + $0x10] sm:$0xff]  ;;  %2203 = vst.msk [vmem:[#allocation2] sm:$0xff] %vm1659_vm3, %v2200_v47  ;;  %2204 = vst.msk [vmem:[#allocation2 + $0x8] sm:$0xff] %vm1659_vm3, %v2201_v48 }
 0x655   : > { %2205 = vst.msk [vmem:[#allocation2 + $0x10] sm:$0xff] %vm1659_vm3, %v2202_v49 }
 0x656 PF: > { %p2930_p9 = scmp.ne.s32.totalorder %s3481_s2, 4 }
 0x657   : > { %s4268_s20 = sld [smem:[#allocation27_spill]] (!%p2930_p9)  ;;  %v2222_v53 = vpack.c.bf16 (!%p2930_p9), %v3881_v15, %v3877_v52  ;;  %vm2246_vm14 = vcmask (!%p2930_p9), 261120   ;;  %s4270_s25 = sld [smem:[#allocation26_spill]] (!%p2930_p9)  ;;  %v2223_v56 = vpack.c.bf16 (!%p2930_p9), %v3879_v14, %v3875_v13  ;;  %v2224_v52 = vpack.c.bf16 (!%p2930_p9), %v3897_v22, %v3893_v20 }
 0x658   : > { %2209 = sbr.rel (%p2930_p9) target bundleno = 2170 (0x87a), region = 116  ;;  %v2225_v59 = vpack.c.bf16 (!%p2930_p9), %v3895_v21, %v3891_v19  ;;  %v2226_v13 = vpack.c.bf16 (!%p2930_p9), %v3913_v30, %v3909_v28  ;;  %v2227_v14 = vpack.c.bf16 (!%p2930_p9), %v3911_v29, %v3907_v27  ;;  %v2228_v20 = vpack.c.bf16 (!%p2930_p9), %v3929_v38, %v3925_v36  ;;  %s4272_s18 = sld [smem:[#allocation28_spill]] (!%p2930_p9) }
 0x659   : > { %3208 = vmatprep.mubr.msk.bf16.mxu0 (!%p2930_p9), %vm2246_vm14, %v2222_v53  ;;  %v2229_v19 = vpack.c.bf16 (!%p2930_p9), %v3927_v37, %v3923_v35  ;;  %v2210_v21 = vpack.c.bf16 (!%p2930_p9), %v3873_v12, %v3869_v10  ;;  %v2211_v22 = vpack.c.bf16 (!%p2930_p9), %v3871_v11, %v3867_v9  ;;  %v2212_v27 = vpack.c.bf16 (!%p2930_p9), %v3889_v18, %v3885_v16  ;;  %s4273_s15 = sld [smem:[#allocation29_spill]] (!%p2930_p9)  ;;  %s2549_s26 = sld [smem:[#allocation4]] (!%p2930_p9) }
 0x65a   : > { %v2213_v28 = vpack.c.bf16 (!%p2930_p9), %v3887_v17, %v3883_v57  ;;  %v2214_v10 = vpack.c.bf16 (!%p2930_p9), %v3905_v26, %v3901_v24  ;;  %v2215_v9 = vpack.c.bf16 (!%p2930_p9), %v3903_v25, %v3899_v23  ;;  %v2216_v11 = vpack.c.bf16 (!%p2930_p9), %v3921_v34, %v3917_v32 }
 0x65b   : > { %v2217_v12 = vpack.c.bf16 (!%p2930_p9), %v3919_v33, %v3915_v31  ;;  %v3499_v57 = vmov (!%p2930_p9), 0.0   ;;  %vm3500_vm15 = vmmov (!%p2930_p9), 0  }
 0x65c   : > { %3244 = vmatprep.subr.bf16.mxu1 (!%p2930_p9), %v3499_v57  ;;  %3260 = vmatprep.mubr.msk.bf16.mxu1 (!%p2930_p9), %vm3500_vm15, %v3499_v57 }
 0x65d   : > { %s4269_s19 = smov (!%p2930_p9), %s4268_s20  ;;  %v3395_v50 = vld [vmem:[%s4268_s20] sm:$0xff] (!%p2930_p9)   ;;  %s4271_s30 = smov (!%p2930_p9), %s4270_s25 }
 0x65e   : > { %v3396_v54 = vld [vmem:[%s4269_s19 + $0x8] sm:$0xff] (!%p2930_p9)   ;;  %3204 = vmatprep.subr.bf16.mxu0 (!%p2930_p9), %v3395_v50  ;;  %v3397_v55 = vld [vmem:[%s4270_s25] sm:$0xff] (!%p2930_p9)  }
 0x65f   : > { %3205 = vmatpush3.bf16.msra.mxu0 %v3395_v50  ;;  %v3398_v15 = vld [vmem:[%s4271_s30 + $0x8] sm:$0xff]   ;;  %v2951_v16 = vld [vmem:[%s4272_s18] ss:$0 sm:$0xff] }
 0x660   : > { %3206 = vmatprep.subr.bf16.mxu0 %v3396_v54 }
 0x663   : > { %3207 = vmatpush3.bf16.msra.mxu0 %v3396_v54 }
 0x664   : > { %3224 = vmatprep.subr.bf16.mxu0 %v3397_v55 }
 0x666   : > { %3209 = vmatmul.mubr.msk.bf16.vlgmr.msra.gmra.mrb[0].mxu0 %vm2246_vm14, %v2223_v56 }
 0x667   : > { %3225 = vmatpush3.bf16.msra.mxu0 %v3397_v55  ;;  %3212 = vmatprep.mubr.msk.bf16.mxu0 %vm2246_vm14, %v2224_v52 }
 0x668   : > { %3226 = vmatprep.subr.bf16.mxu0 %v3398_v15 }
 0x66b   : > { %3227 = vmatpush3.bf16.msra.mxu0 %v3398_v15 }
 0x66e   : > { %3213 = vmatmul.mubr.msk.bf16.gmra.mrb[4].mxu0 %vm2246_vm14, %v2225_v59 }
 0x66f   : > { %3216 = vmatprep.mubr.msk.bf16.mxu0 %vm2246_vm14, %v2226_v13 }
 0x676   : > { %3217 = vmatmul.mubr.msk.bf16.gmra.mrb[8].mxu0 %vm2246_vm14, %v2227_v14 }
 0x677   : > { %3220 = vmatprep.mubr.msk.bf16.mxu0 %vm2246_vm14, %v2228_v20 }
 0x67e   : > { %3221 = vmatmul.mubr.msk.bf16.gmra.mrb[12].mxu0 %vm2246_vm14, %v2229_v19 }
 0x67f   : > { %3228 = vmatprep.mubr.msk.bf16.mxu0 %vm2246_vm14, %v2210_v21 }
 0x686   : > { %3229 = vmatmul.mubr.msk.bf16.vlgmr.msra.gmra.mrb[0].mxu0 %vm2246_vm14, %v2211_v22 }
 0x687   : > { %3232 = vmatprep.mubr.msk.bf16.mxu0 %vm2246_vm14, %v2212_v27 }
 0x68e   : > { %3233 = vmatmul.mubr.msk.bf16.gmra.mrb[4].mxu0 %vm2246_vm14, %v2213_v28 }
 0x68f   : > { %3236 = vmatprep.mubr.msk.bf16.mxu0 %vm2246_vm14, %v2214_v10 }
 0x696   : > { %3237 = vmatmul.mubr.msk.bf16.gmra.mrb[8].mxu0 %vm2246_vm14, %v2215_v9 }
 0x697   : > { %3240 = vmatprep.mubr.msk.bf16.mxu0 %vm2246_vm14, %v2216_v11 }
 0x69e   : > { %3241 = vmatmul.mubr.msk.bf16.gmra.mrb[12].mxu0 %vm2246_vm14, %v2217_v12 }
 0x759   : > { %v3230_v17 = vpop.f32.mrb[0].mxu0 }
 0x75a   : > { %v2510_v18 = vadd.f32 %v3230_v17, %v2951_v16  ;;  %v2438_v23 = vpop.f32.mrb[1].mxu0 }
 0x75b   : > { %v2508_v24 = vadd.f32 %v2951_v16, %v2438_v23  ;;  %v3231_v25 = vpop.f32.mrb[2].mxu0  ;;  %v2550_v23 = vstv %s2549_s26 }
 0x75c   : > { %v2511_v26 = vadd.f32 %v3231_v25, %v2951_v16  ;;  %v2441_v29 = vpop.f32.mrb[3].mxu0  ;;  %v2526_v31 = vmax.f32 %v2510_v18, 0.0  ;;  %v2540_v18 = vld [vmem:[%s4273_s15] sm:$0x1] }
 0x75d   : > { %v2509_v30 = vadd.f32 %v2951_v16, %v2441_v29  ;;  %v2524_v33 = vmax.f32 %v2508_v24, 0.0 }
 0x75e   : > { %v2527_v32 = vmax.f32 %v2511_v26, 0.0 }
 0x75f   : > { %v2525_v34 = vmax.f32 %v2509_v30, 0.0 }
 0x760   : > { %v2542_v35 = vpack.c.bf16 %v2527_v32, %v2526_v31 }
 0x761   : > { %v3234_v36 = vpop.f32.mrb[4].mxu0  ;;  %v2541_v37 = vpack.c.bf16 %v2525_v34, %v2524_v33 }
 0x762   : > { %v2514_v38 = vadd.f32 %v3234_v36, %v2951_v16  ;;  %v2454_v51 = vpop.f32.mrb[5].mxu0  ;;  %v2558_v60 = vsel %vm2246_vm14, %v2542_v35, 0 }
 0x763   : > { %v2512_v0 = vadd.f32 %v2951_v16, %v2454_v51  ;;  %v3235_v1 = vpop.f32.mrb[6].mxu0  ;;  %v2555_v2 = vsel %vm2246_vm14, %v2541_v37, 0 }
 0x764   : > { %v2515_v3 = vadd.f32 %v3235_v1, %v2951_v16  ;;  %v2457_v4 = vpop.f32.mrb[7].mxu0  ;;  %3245 = vmatpush3.bf16.xpose.msra.mxu1 %v2555_v2  ;;  %v2530_v6 = vmax.f32 %v2514_v38, 0.0 }
 0x765   : > { %v2513_v5 = vadd.f32 %v2951_v16, %v2457_v4  ;;  %3246 = vmatprep.subr.bf16.mxu1 %v3499_v57  ;;  %v2528_v8 = vmax.f32 %v2512_v0, 0.0 }
 0x766   : > { %v2531_v7 = vmax.f32 %v2515_v3, 0.0 }
 0x767   : > { %v2529_v39 = vmax.f32 %v2513_v5, 0.0 }
 0x768   : > { %v2544_v40 = vpack.c.bf16 %v2531_v7, %v2530_v6 }
 0x769   : > { %v2543_v58 = vpack.c.bf16 %v2529_v39, %v2528_v8  ;;  %v3238_v41 = vpop.f32.mrb[8].mxu0 }
 0x76a   : > { %v2518_v42 = vadd.f32 %v3238_v41, %v2951_v16  ;;  %v2470_v43 = vpop.f32.mrb[9].mxu0  ;;  %v2564_v9 = vsel %vm2246_vm14, %v2544_v40, 0 }
 0x76b   : > { %v2516_v63 = vadd.f32 %v2951_v16, %v2470_v43  ;;  %v3239_v44 = vpop.f32.mrb[10].mxu0  ;;  %v2561_v59 = vsel %vm2246_vm14, %v2543_v58, 0 }
 0x76c   : > { %v2519_v62 = vadd.f32 %v3239_v44, %v2951_v16  ;;  %v2473_v45 = vpop.f32.mrb[11].mxu0  ;;  %3247 = vmatpush3.bf16.xpose.msra.mxu1 %v2558_v60  ;;  %v2534_v46 = vmax.f32 %v2518_v42, 0.0 }
 0x76d   : > { %v2517_v61 = vadd.f32 %v2951_v16, %v2473_v45  ;;  %3248 = vmatprep.subr.bf16.mxu1 %v3499_v57  ;;  %v2532_v48 = vmax.f32 %v2516_v63, 0.0 }
 0x76e   : > { %v2535_v47 = vmax.f32 %v2519_v62, 0.0 }
 0x76f   : > { %v2533_v49 = vmax.f32 %v2517_v61, 0.0 }
 0x770   : > { %v2546_v50 = vpack.c.bf16 %v2535_v47, %v2534_v46 }
 0x771   : > { %v2545_v53 = vpack.c.bf16 %v2533_v49, %v2532_v48  ;;  %v3242_v54 = vpop.f32.mrb[12].mxu0 }
 0x772   : > { %v2522_v55 = vadd.f32 %v3242_v54, %v2951_v16  ;;  %v2486_v56 = vpop.f32.mrb[13].mxu0  ;;  %v2570_v12 = vsel %vm2246_vm14, %v2546_v50, 0 }
 0x773   : > { %v2520_v52 = vadd.f32 %v2951_v16, %v2486_v56  ;;  %v3243_v15 = vpop.f32.mrb[14].mxu0  ;;  %v2567_v11 = vsel %vm2246_vm14, %v2545_v53, 0 }
 0x774   : > { %v2523_v13 = vadd.f32 %v3243_v15, %v2951_v16  ;;  %v2489_v14 = vpop.f32.mrb[15].mxu0  ;;  %3249 = vmatpush3.bf16.xpose.msra.mxu1 %v2561_v59  ;;  %v2538_v19 = vmax.f32 %v2522_v55, 0.0 }
 0x775   : > { %v2521_v20 = vadd.f32 %v2951_v16, %v2489_v14  ;;  %3250 = vmatprep.subr.bf16.mxu1 %v3499_v57  ;;  %v2536_v22 = vmax.f32 %v2520_v52, 0.0 }
 0x776   : > { %v2539_v21 = vmax.f32 %v2523_v13, 0.0 }
 0x777   : > { %v2537_v27 = vmax.f32 %v2521_v20, 0.0 }
 0x778   : > { %v2548_v28 = vpack.c.bf16 %v2539_v21, %v2538_v19 }
 0x779   : > { %v2547_v10 = vpack.c.bf16 %v2537_v27, %v2536_v22 }
 0x77a   : > { %v2576_v17 = vsel %vm2246_vm14, %v2548_v28, 0 }
 0x77b   : > { %v2573_v16 = vsel %vm2246_vm14, %v2547_v10, 0 }
 0x77c   : > { %3251 = vmatpush3.bf16.xpose.msra.mxu1 %v2564_v9 }
 0x77d   : > { %3252 = vmatprep.subr.bf16.mxu1 %v3499_v57 }
 0x784   : > { %3253 = vmatpush3.bf16.xpose.msra.mxu1 %v2567_v11 }
 0x785   : > { %3254 = vmatprep.subr.bf16.mxu1 %v3499_v57 }
 0x78c   : > { %3255 = vmatpush3.bf16.xpose.msra.mxu1 %v2570_v12 }
 0x78d   : > { %3256 = vmatprep.subr.bf16.mxu1 %v3499_v57 }
 0x794   : > { %3257 = vmatpush3.bf16.xpose.msra.mxu1 %v2573_v16 }
 0x795   : > { %3258 = vmatprep.subr.bf16.mxu1 %v3499_v57 }
 0x79c   : > { %3259 = vmatpush3.bf16.xpose.msra.mxu1 %v2576_v17 }
 0x7a3   : > { %3261 = vmatmul.mubr.msk.bf16.vlgmr.msra.gmra.mrb[0].mxu1 %vm2246_vm14, %v2540_v18 }
 0x876   : > { %v2612_v24 = vpop.f32.mrb[0].mxu1 }
 0x877   : > { %v2613_v25 = vadd.f32 %v2612_v24, %v2550_v23  ;;  %v3262_v26 = vpop.f32.mrb[1].mxu1 }
 0x878   : > { %v2615_v29 = vpop.f32.mrb[2].mxu1 }
 0x879   : > { %2618 = vst [vmem:[%s3735_s17] sm:$0x1] %v2613_v25  ;;  %v3263_v30 = vpop.f32.mrb[3].mxu1 }
 0x87a PF: > { %s4274_s4 = sld [smem:[#allocation18_spill]]  ;;  %s4275_s28 = sld [smem:[#allocation30_spill]] }
 0x87b   : > { %s2632_s0 = sshll.u32 %s3735_s17, 4  ;;  %s4277_s1 = sand.u32 1, %s3469_s21   ;;  %s2633_s0 = int_to_ptr.vmem [resolvable:$true] %s2632_s0 }
 0x87c   : > { %s2620_s2 = scalar_lea.sflag [#allocation6], %s4277_s1  ;;  %s3399_s25 = scalar_lea.vmem %s2633_s0, 16 }
 0x87d   : > { %p3400_p10 = scmp.ne.s32.totalorder %s2633_s0, %s3399_s25  ;;  %s3501_s8 = smov [#allocation5]  }
 0x87e   : > { %s3403_s23 = sshll.u32 %s3501_s8, 4  ;;  %s3404_s23 = int_to_ptr.vmem [resolvable:$false] %s3403_s23 }
 0x87f   : > { %p3401_p11 = pnand %p3400_p10, %p3657_p3  ;;  %s3405_s14 = scalar_lea.vmem %s3404_s23, 32 }
 0x880   : > { %s4147_s22 = scalar_lea.hbm %s4275_s28, %s4274_s4  ;;  %p3406_p13 = scmp.lt.s32.totalorder %s2633_s0, %s3404_s23 }
 0x881   : > { %p3402_p12 = pneg %p3401_p11  ;;  %p3407_p0 = scmp.lt.s32.totalorder %s3405_s14, %s3399_s25 }
 0x883   : > { %p3408_p1 = por %p3407_p0, %p3406_p13 }
 0x885   : > { %p3409_p2 = pnand %p3408_p1, %p3402_p12 }
 0x887   : > { %3412 = shalt.err (!%p3409_p2)
}
 0x888   : > { %s3413_s17 = scalar_lea.hbm %s4147_s22, 16  ;;  %s3417_s16 = scalar_lea.hbm %s4275_s28, 48 }
 0x889   : > { %p3414_p4 = scmp.ne.s32.totalorder %s4147_s22, %s3413_s17  ;;  %p3418_p7 = scmp.lt.u32.totalorder %s4147_s22, %s4275_s28 }
 0x88a   : > { %p3419_p9 = scmp.lt.u32.totalorder %s3417_s16, %s3413_s17  ;;  %p3421_p11 = scmp.lt.u32.totalorder %s3413_s17, %s4147_s22 }
 0x88b   : > { %p3415_p5 = pnand %p3414_p4, %p3657_p3 }
 0x88c   : > { %p3420_p10 = por %p3419_p9, %p3418_p7 }
 0x88d   : > { %p3416_p6 = pneg %p3415_p5 }
 0x88e   : > { %p3422_p12 = por %p3421_p11, %p3420_p10 }
 0x890   : > { %p3423_p13 = pnand %p3422_p12, %p3416_p6 }
 0x892   : > { %3426 = shalt.err (!%p3423_p13)
}
 0x893   : > { %3300 = dma.vmem_to_hbm [thread:$0]  (%p3657_p3), %s2633_s0, 16, %s4147_s22, %s2620_s2  }
 0x894 PF: > { %s4278_s26 = sld [smem:[#allocation12_spill]]  ;;  %s4279_s4 = sld [smem:[#allocation8_spill]] }
 0x89a   : > { %p3306_p0 = scmp.ge.s32.totalorder %s4278_s26, 2  ;;  %s2644_s29 = sand.u32 1, %s4279_s4  }
 0x89b   : > { %s2645_s1 = scalar_lea.sflag [#allocation6], %s2644_s29 }
 0x89c   : > { %p3303_p1 = pnand %p3306_p0, %p3668_p8 }
 0x89e   : > { %3460 = dma.done.wait (!%p3303_p1), %s2645_s1, 16  }
 0x89f   : > { %3462 = vsyncadd (!%p3303_p1), %s2645_s1, 4294967280  ;;  %s33_s25 = sadd.s32 1, %s4278_s26   ;;  %s4281_s8 = sld [smem:[#allocation9_spill]] }
 0x8a0   : > { %p30_p2 = scmp.ge.s32.totalorder %s33_s25, 17   ;;  %s4282_s1 = sld [smem:[#allocation16_spill]] }
 0x8a1   : > { %s4283_s22 = sld [smem:[#allocation10_spill]]  ;;  %s4284_s2 = sld [smem:[#allocation11_spill]] }
 0x8a2   : > { %s4285_s23 = sld [smem:[#allocation13_spill]]  ;;  %s4286_s24 = sld [smem:[#allocation15_spill]] }
 0x8a3   : > { %s4287_s20 = smov %s3469_s21  ;;  %32 = sbr.rel (!%p30_p2) target bundleno = 19 (0x13), region = 175 }
 0x8a5   : > { %s4288_s21 = smov %s4281_s8 }
 0x8aa   :  { %2649 = vsyncpa [#allocation6], 1 }
 0x8ab   :  { %2651 = vsyncpa [#allocation6 + $0x1], 1 }

</bundles_post_ra>
